<compile_context>
chip_gen: v5e
topology: v5e:2x2
jax: 0.10.0
libtpu: 0.0.40
codegen_flags: <defaults>
</compile_context>

<pallas_src>
import functools

import jax
import jax.numpy as jnp
from jax import lax
from jax.experimental import pallas as pl
from jax.experimental.pallas import tpu as pltpu

LANE = 128
SUBLANE = 8


def _round_up(n, m):
    return ((n + m - 1) // m) * m


# ---------------------------------------------------------------------------
# Pallas kernel: entire MedNet forward on one block of batch rows.
# ---------------------------------------------------------------------------
def _elu(y):
    # ELU(alpha=1).  Negative branch = exp(y) - 1; the min-clamp keeps the
    # unselected branch finite.  Single EUP transcendental, no divide.
    return jnp.where(y > 0, y, jnp.exp(jnp.minimum(y, 0.0)) - 1.0)


def _dense(h, w_ref, b_ref, apply_elu):
    y = jnp.dot(h, w_ref[...], preferred_element_type=jnp.float32) + b_ref[...]
    return _elu(y) if apply_elu else y


def _mednet_kernel(x_ref,
                   w1_ref, b1_ref, w2_ref, b2_ref, w3_ref, b3_ref,
                   w4_ref, b4_ref, w5_ref, b5_ref,
                   o_ref):
    h = x_ref[...]                              # (tm, d0) f32, lane padded
    h = _dense(h, w1_ref, b1_ref, True)         # conv1 (folded to dense) + ELU
    h = _dense(h, w2_ref, b2_ref, True)         # conv2 (folded to dense) + ELU
    h = _dense(h, w3_ref, b3_ref, True)         # fc1 + ELU
    h = _dense(h, w4_ref, b4_ref, True)         # fc2 + ELU
    h = _dense(h, w5_ref, b5_ref, False)        # fc3 (logits, lane-padded)
    o_ref[...] = h


def _fused_forward(x2d, layers, tm):
    """x2d: (M, d0) f32 with M % tm == 0 and d0 % 128 == 0."""
    m_rows, d0 = x2d.shape
    n_out = layers[-1][0].shape[1]
    grid = (m_rows // tm,)

    in_specs = [pl.BlockSpec((tm, d0), lambda m: (m, 0))]
    args = [x2d]
    for w, b in layers:
        k, n = w.shape
        # Constant index maps: weights/biases DMA'd once, reused every step.
        in_specs.append(pl.BlockSpec((k, n), lambda m: (0, 0)))
        in_specs.append(pl.BlockSpec((1, n), lambda m: (0, 0)))
        args.append(w)
        args.append(b)

    return pl.pallas_call(
        _mednet_kernel,
        out_shape=jax.ShapeDtypeStruct((m_rows, n_out), jnp.float32),
        grid=grid,
        in_specs=in_specs,
        out_specs=pl.BlockSpec((tm, n_out), lambda m: (m, 0)),
        compiler_params=pltpu.CompilerParams(
            dimension_semantics=("parallel",)),
    )(*args)


# ---------------------------------------------------------------------------
# One-time parameter preparation (never on the per-forward critical path).
# ---------------------------------------------------------------------------
def prepare_mednet_params(params, xDim, yDim):
    """Fold convs into dense matrices, permute/transpose fc weights, pad lanes."""
    f32 = jnp.float32
    co1, _, cs1, _ = params["cnv1_w"].shape           # 5, 1, 7, 7
    co2, _, cs2, _ = params["cnv2_w"].shape           # 10, 5, 7, 7
    h1, w1 = xDim - (cs1 - 1), yDim - (cs1 - 1)
    h2, w2 = h1 - (cs2 - 1), w1 - (cs2 - 1)
    dn = ("NCHW", "OIHW", "NCHW")

    # conv1 -> dense: rows = flat input pixels (h*W + w), cols = NHWC-flat output.
    d_in = xDim * yDim
    basis1 = jnp.eye(d_in, dtype=f32).reshape(d_in, 1, xDim, yDim)
    y1 = lax.conv_general_dilated(basis1, params["cnv1_w"].astype(f32),
                                  (1, 1), "VALID", dimension_numbers=dn)
    w1d = jnp.transpose(y1, (0, 2, 3, 1)).reshape(d_in, h1 * w1 * co1)
    b1d = jnp.tile(params["cnv1_b"].astype(f32), h1 * w1)

    # conv2 -> dense: rows = NHWC-flat conv1 output, cols = NHWC-flat conv2 output.
    d_mid = h1 * w1 * co1
    basis2 = jnp.eye(d_mid, dtype=f32).reshape(d_mid, h1, w1, co1)
    basis2 = jnp.transpose(basis2, (0, 3, 1, 2))
    y2 = lax.conv_general_dilated(basis2, params["cnv2_w"].astype(f32),
                                  (1, 1), "VALID", dimension_numbers=dn)
    w2d = jnp.transpose(y2, (0, 2, 3, 1)).reshape(d_mid, h2 * w2 * co2)
    b2d = jnp.tile(params["cnv2_b"].astype(f32), h2 * w2)

    # fc1: permute rows from PyTorch's NCHW flatten to NHWC flatten, transpose to (K, N).
    fc1 = params["ful1_w"].astype(f32).reshape(-1, co2, h2, w2)
    w3d = jnp.transpose(fc1, (2, 3, 1, 0)).reshape(h2 * w2 * co2, -1)
    b3d = params["ful1_b"].astype(f32)

    w4d = params["ful2_w"].astype(f32).T
    b4d = params["ful2_b"].astype(f32)
    w5d = params["ful3_w"].astype(f32).T
    b5d = params["ful3_b"].astype(f32)

    def pad_layer(w, b, k_pad, n_pad):
        w = jnp.pad(w, ((0, k_pad - w.shape[0]), (0, n_pad - w.shape[1])))
        b = jnp.pad(b, (0, n_pad - b.shape[0])).reshape(1, n_pad)
        return w, b

    dims = [d_in, w1d.shape[1], w2d.shape[1], w3d.shape[1], w4d.shape[1], w5d.shape[1]]
    pdims = [_round_up(d, LANE) for d in dims]
    raw = [(w1d, b1d), (w2d, b2d), (w3d, b3d), (w4d, b4d), (w5d, b5d)]

    prep = {}
    for i, (w, b) in enumerate(raw):
        wp, bp = pad_layer(w, b, pdims[i], pdims[i + 1])
        prep[f"w{i + 1}"] = wp
        prep[f"b{i + 1}"] = bp
    return prep


@functools.partial(jax.jit, static_argnums=(2,))
def mednet_forward(prep, x_nchw, numC):
    n = x_nchw.shape[0]
    # NCHW flatten with Ci=1 is just (h*W + w), matching the dense conv1 rows.
    x2d = jnp.reshape(x_nchw, (n, -1)).astype(jnp.float32)
    d0p = prep["w1"].shape[0]
    if x2d.shape[1] != d0p:                       # static; no-op for 16x16 inputs
        x2d = jnp.pad(x2d, ((0, 0), (0, d0p - x2d.shape[1])))

    # Sublane-align the batch and pad to a whole number of row tiles so every
    # block is exact (no masked stores, no partial trailing block).
    tm = 256 if n > 256 else max(SUBLANE, _round_up(n, SUBLANE))
    m_pad = _round_up(n, tm)
    if m_pad != n:
        x2d = jnp.pad(x2d, ((0, m_pad - n), (0, 0)))

    layers = [(prep[f"w{i}"], prep[f"b{i}"]) for i in range(1, 6)]
    out = _fused_forward(x2d, layers, tm)         # (m_pad, 128) lane-dense
    return out[:n, :numC]


# ---------------------------------------------------------------------------
# Raw (PyTorch-layout) parameter init + pure-JAX reference.
# ---------------------------------------------------------------------------
def init_mednet_params(key, xDim, yDim, numC):
    numConvs1, convSize1 = 5, 7
    numConvs2, convSize2 = 10, 7
    outX = xDim - (convSize1 - 1) - (convSize2 - 1)
    outY = yDim - (convSize1 - 1) - (convSize2 - 1)
    numNodesToFC = numConvs2 * outX * outY
    fcSize1, fcSize2 = 400, 80

    ks = jax.random.split(key, 10)

    def u(k, shape, fan_in):
        bound = 1.0 / jnp.sqrt(jnp.float32(fan_in))
        return jax.random.uniform(k, shape, jnp.float32, -bound, bound)

    fan_c1 = 1 * convSize1 * convSize1
    fan_c2 = numConvs1 * convSize2 * convSize2
    return {
        "cnv1_w": u(ks[0], (numConvs1, 1, convSize1, convSize1), fan_c1),
        "cnv1_b": u(ks[1], (numConvs1,), fan_c1),
        "cnv2_w": u(ks[2], (numConvs2, numConvs1, convSize2, convSize2), fan_c2),
        "cnv2_b": u(ks[3], (numConvs2,), fan_c2),
        "ful1_w": u(ks[4], (fcSize1, numNodesToFC), numNodesToFC),
        "ful1_b": u(ks[5], (fcSize1,), numNodesToFC),
        "ful2_w": u(ks[6], (fcSize2, fcSize1), fcSize1),
        "ful2_b": u(ks[7], (fcSize2,), fcSize1),
        "ful3_w": u(ks[8], (numC, fcSize2), fcSize2),
        "ful3_b": u(ks[9], (numC,), fcSize2),
    }


def mednet_reference(params, x_nchw):
    def conv(x, w, b):
        y = lax.conv_general_dilated(
            x, w, window_strides=(1, 1), padding="VALID",
            dimension_numbers=("NCHW", "OIHW", "NCHW"))
        return jax.nn.elu(y + b[None, :, None, None])

    x = conv(x_nchw.astype(jnp.float32), params["cnv1_w"], params["cnv1_b"])
    x = conv(x, params["cnv2_w"], params["cnv2_b"])
    x = x.reshape(x.shape[0], -1)
    x = jax.nn.elu(x @ params["ful1_w"].T + params["ful1_b"])
    x = jax.nn.elu(x @ params["ful2_w"].T + params["ful2_b"])
    x = x @ params["ful3_w"].T + params["ful3_b"]
    return x


if __name__ == "__main__":
    xDim, yDim, numC = 16, 16, 6
    batch = 2

    key = jax.random.PRNGKey(0)
    k_par, k_in = jax.random.split(key)
    params = init_mednet_params(k_par, xDim, yDim, numC)
    prep = prepare_mednet_params(params, xDim, yDim)
    x = jax.random.normal(k_in, (batch, 1, xDim, yDim), jnp.float32)

    out = jax.block_until_ready(mednet_forward(prep, x, numC))
    ref = jax.block_until_ready(mednet_reference(params, x))

    assert out.shape == (batch, numC), out.shape
    assert jnp.allclose(out, ref, atol=1e-4, rtol=1e-4), (out, ref)
    print("KERNEL_OK")
</pallas_src>

<mosaic_0001>
module attributes {stable_mosaic.version = 11 : i64} {
  func.func @_mednet_kernel(%arg0: i32, %arg1: memref<8x256xf32, #tpu.memory_space<vmem>>, %arg2: memref<256x512xf32, #tpu.memory_space<vmem>>, %arg3: memref<1x512xf32, #tpu.memory_space<vmem>>, %arg4: memref<512x256xf32, #tpu.memory_space<vmem>>, %arg5: memref<1x256xf32, #tpu.memory_space<vmem>>, %arg6: memref<256x512xf32, #tpu.memory_space<vmem>>, %arg7: memref<1x512xf32, #tpu.memory_space<vmem>>, %arg8: memref<512x128xf32, #tpu.memory_space<vmem>>, %arg9: memref<1x128xf32, #tpu.memory_space<vmem>>, %arg10: memref<128x128xf32, #tpu.memory_space<vmem>>, %arg11: memref<1x128xf32, #tpu.memory_space<vmem>>, %arg12: memref<8x128xf32, #tpu.memory_space<vmem>>) attributes {dimension_semantics = [#tpu.dimension_semantics<parallel>], iteration_bounds = array<i64: 1>, scalar_prefetch = 0 : i64, scratch_operands = 0 : i64, tpu.core_type = #tpu.core_type<tc>, window_params = [{transform_indices = @transform_0, window_bounds = array<i64: 8, 256>}, {pipeline_mode = #tpu.pipeline_mode<synchronous>, transform_indices = @transform_1, window_bounds = array<i64: 256, 512>}, {pipeline_mode = #tpu.pipeline_mode<synchronous>, transform_indices = @transform_2, window_bounds = array<i64: 1, 512>}, {pipeline_mode = #tpu.pipeline_mode<synchronous>, transform_indices = @transform_3, window_bounds = array<i64: 512, 256>}, {pipeline_mode = #tpu.pipeline_mode<synchronous>, transform_indices = @transform_4, window_bounds = array<i64: 1, 256>}, {pipeline_mode = #tpu.pipeline_mode<synchronous>, transform_indices = @transform_5, window_bounds = array<i64: 256, 512>}, {pipeline_mode = #tpu.pipeline_mode<synchronous>, transform_indices = @transform_6, window_bounds = array<i64: 1, 512>}, {pipeline_mode = #tpu.pipeline_mode<synchronous>, transform_indices = @transform_7, window_bounds = array<i64: 512, 128>}, {pipeline_mode = #tpu.pipeline_mode<synchronous>, transform_indices = @transform_8, window_bounds = array<i64: 1, 128>}, {pipeline_mode = #tpu.pipeline_mode<synchronous>, transform_indices = @transform_9, window_bounds = array<i64: 128, 128>}, {pipeline_mode = #tpu.pipeline_mode<synchronous>, transform_indices = @transform_10, window_bounds = array<i64: 1, 128>}, {transform_indices = @transform_11, window_bounds = array<i64: 8, 128>}]} {
    %c0 = arith.constant 0 : index
    %c0_0 = arith.constant 0 : index
    %0 = vector.load %arg1[%c0, %c0_0] : memref<8x256xf32, #tpu.memory_space<vmem>>, vector<8x256xf32>
    %c0_1 = arith.constant 0 : index
    %c0_2 = arith.constant 0 : index
    %1 = vector.load %arg2[%c0_1, %c0_2] : memref<256x512xf32, #tpu.memory_space<vmem>>, vector<256x512xf32>
    %cst = arith.constant dense<0.000000e+00> : vector<8x512xf32>
    %2 = tpu.matmul %0, %1, %cst {dimension_numbers = #tpu.dot_dimension_numbers<[1], [0], [0], [1], [0, 0, 1, 1], [], []>} : vector<8x256xf32>, vector<256x512xf32>, vector<8x512xf32> -> vector<8x512xf32>
    %c0_3 = arith.constant 0 : index
    %c0_4 = arith.constant 0 : index
    %3 = vector.load %arg3[%c0_3, %c0_4] : memref<1x512xf32, #tpu.memory_space<vmem>>, vector<1x512xf32>
    %4 = vector.broadcast %3 : vector<1x512xf32> to vector<8x512xf32>
    %5 = arith.addf %2, %4 : vector<8x512xf32>
    %cst_5 = arith.constant 0.000000e+00 : f32
    %6 = vector.broadcast %cst_5 : f32 to vector<8x512xf32>
    %7 = arith.cmpf ogt, %5, %6 : vector<8x512xf32>
    %cst_6 = arith.constant 0.000000e+00 : f32
    %8 = vector.broadcast %cst_6 : f32 to vector<8x512xf32>
    %9 = arith.minimumf %5, %8 : vector<8x512xf32>
    %10 = math.exp %9 : vector<8x512xf32>
    %cst_7 = arith.constant 1.000000e+00 : f32
    %11 = vector.broadcast %cst_7 : f32 to vector<8x512xf32>
    %12 = arith.subf %10, %11 : vector<8x512xf32>
    %13 = arith.select %7, %5, %12 : vector<8x512xi1>, vector<8x512xf32>
    %c0_8 = arith.constant 0 : index
    %c0_9 = arith.constant 0 : index
    %14 = vector.load %arg4[%c0_8, %c0_9] : memref<512x256xf32, #tpu.memory_space<vmem>>, vector<512x256xf32>
    %cst_10 = arith.constant dense<0.000000e+00> : vector<8x256xf32>
    %15 = tpu.matmul %13, %14, %cst_10 {dimension_numbers = #tpu.dot_dimension_numbers<[1], [0], [0], [1], [0, 0, 1, 1], [], []>} : vector<8x512xf32>, vector<512x256xf32>, vector<8x256xf32> -> vector<8x256xf32>
    %c0_11 = arith.constant 0 : index
    %c0_12 = arith.constant 0 : index
    %16 = vector.load %arg5[%c0_11, %c0_12] : memref<1x256xf32, #tpu.memory_space<vmem>>, vector<1x256xf32>
    %17 = vector.broadcast %16 : vector<1x256xf32> to vector<8x256xf32>
    %18 = arith.addf %15, %17 : vector<8x256xf32>
    %cst_13 = arith.constant 0.000000e+00 : f32
    %19 = vector.broadcast %cst_13 : f32 to vector<8x256xf32>
    %20 = arith.cmpf ogt, %18, %19 : vector<8x256xf32>
    %cst_14 = arith.constant 0.000000e+00 : f32
    %21 = vector.broadcast %cst_14 : f32 to vector<8x256xf32>
    %22 = arith.minimumf %18, %21 : vector<8x256xf32>
    %23 = math.exp %22 : vector<8x256xf32>
    %cst_15 = arith.constant 1.000000e+00 : f32
    %24 = vector.broadcast %cst_15 : f32 to vector<8x256xf32>
    %25 = arith.subf %23, %24 : vector<8x256xf32>
    %26 = arith.select %20, %18, %25 : vector<8x256xi1>, vector<8x256xf32>
    %c0_16 = arith.constant 0 : index
    %c0_17 = arith.constant 0 : index
    %27 = vector.load %arg6[%c0_16, %c0_17] : memref<256x512xf32, #tpu.memory_space<vmem>>, vector<256x512xf32>
    %cst_18 = arith.constant dense<0.000000e+00> : vector<8x512xf32>
    %28 = tpu.matmul %26, %27, %cst_18 {dimension_numbers = #tpu.dot_dimension_numbers<[1], [0], [0], [1], [0, 0, 1, 1], [], []>} : vector<8x256xf32>, vector<256x512xf32>, vector<8x512xf32> -> vector<8x512xf32>
    %c0_19 = arith.constant 0 : index
    %c0_20 = arith.constant 0 : index
    %29 = vector.load %arg7[%c0_19, %c0_20] : memref<1x512xf32, #tpu.memory_space<vmem>>, vector<1x512xf32>
    %30 = vector.broadcast %29 : vector<1x512xf32> to vector<8x512xf32>
    %31 = arith.addf %28, %30 : vector<8x512xf32>
    %cst_21 = arith.constant 0.000000e+00 : f32
    %32 = vector.broadcast %cst_21 : f32 to vector<8x512xf32>
    %33 = arith.cmpf ogt, %31, %32 : vector<8x512xf32>
    %cst_22 = arith.constant 0.000000e+00 : f32
    %34 = vector.broadcast %cst_22 : f32 to vector<8x512xf32>
    %35 = arith.minimumf %31, %34 : vector<8x512xf32>
    %36 = math.exp %35 : vector<8x512xf32>
    %cst_23 = arith.constant 1.000000e+00 : f32
    %37 = vector.broadcast %cst_23 : f32 to vector<8x512xf32>
    %38 = arith.subf %36, %37 : vector<8x512xf32>
    %39 = arith.select %33, %31, %38 : vector<8x512xi1>, vector<8x512xf32>
    %c0_24 = arith.constant 0 : index
    %c0_25 = arith.constant 0 : index
    %40 = vector.load %arg8[%c0_24, %c0_25] : memref<512x128xf32, #tpu.memory_space<vmem>>, vector<512x128xf32>
    %cst_26 = arith.constant dense<0.000000e+00> : vector<8x128xf32>
    %41 = tpu.matmul %39, %40, %cst_26 {dimension_numbers = #tpu.dot_dimension_numbers<[1], [0], [0], [1], [0, 0, 1, 1], [], []>} : vector<8x512xf32>, vector<512x128xf32>, vector<8x128xf32> -> vector<8x128xf32>
    %c0_27 = arith.constant 0 : index
    %c0_28 = arith.constant 0 : index
    %42 = vector.load %arg9[%c0_27, %c0_28] : memref<1x128xf32, #tpu.memory_space<vmem>>, vector<1x128xf32>
    %43 = vector.broadcast %42 : vector<1x128xf32> to vector<8x128xf32>
    %44 = arith.addf %41, %43 : vector<8x128xf32>
    %cst_29 = arith.constant 0.000000e+00 : f32
    %45 = vector.broadcast %cst_29 : f32 to vector<8x128xf32>
    %46 = arith.cmpf ogt, %44, %45 : vector<8x128xf32>
    %cst_30 = arith.constant 0.000000e+00 : f32
    %47 = vector.broadcast %cst_30 : f32 to vector<8x128xf32>
    %48 = arith.minimumf %44, %47 : vector<8x128xf32>
    %49 = math.exp %48 : vector<8x128xf32>
    %cst_31 = arith.constant 1.000000e+00 : f32
    %50 = vector.broadcast %cst_31 : f32 to vector<8x128xf32>
    %51 = arith.subf %49, %50 : vector<8x128xf32>
    %52 = arith.select %46, %44, %51 : vector<8x128xi1>, vector<8x128xf32>
    %c0_32 = arith.constant 0 : index
    %c0_33 = arith.constant 0 : index
    %53 = vector.load %arg10[%c0_32, %c0_33] : memref<128x128xf32, #tpu.memory_space<vmem>>, vector<128x128xf32>
    %cst_34 = arith.constant dense<0.000000e+00> : vector<8x128xf32>
    %54 = tpu.matmul %52, %53, %cst_34 {dimension_numbers = #tpu.dot_dimension_numbers<[1], [0], [0], [1], [0, 0, 1, 1], [], []>} : vector<8x128xf32>, vector<128x128xf32>, vector<8x128xf32> -> vector<8x128xf32>
    %c0_35 = arith.constant 0 : index
    %c0_36 = arith.constant 0 : index
    %55 = vector.load %arg11[%c0_35, %c0_36] : memref<1x128xf32, #tpu.memory_space<vmem>>, vector<1x128xf32>
    %56 = vector.broadcast %55 : vector<1x128xf32> to vector<8x128xf32>
    %57 = arith.addf %54, %56 : vector<8x128xf32>
    %c0_37 = arith.constant 0 : index
    %c0_38 = arith.constant 0 : index
    %58 = vector.load %arg12[%c0_37, %c0_38] : memref<8x128xf32, #tpu.memory_space<vmem>>, vector<8x128xf32>
    tpu.vector_store %arg12[%c0_37, %c0_38], %57 {strides = array<i32>} : memref<8x128xf32, #tpu.memory_space<vmem>>, vector<8x128xf32>,
    return
  }
  func.func @transform_0(%arg0: i32) -> (i32, i32) {
    %c0_i32 = arith.constant 0 : i32
    %c0_i32_0 = arith.constant 0 : i32
    return %arg0, %c0_i32 : i32, i32
  }
  func.func @transform_1(%arg0: i32) -> (i32, i32) {
    %c0_i32 = arith.constant 0 : i32
    %c0_i32_0 = arith.constant 0 : i32
    %c0_i32_1 = arith.constant 0 : i32
    return %c0_i32, %c0_i32_0 : i32, i32
  }
  func.func @transform_2(%arg0: i32) -> (i32, i32) {
    %c0_i32 = arith.constant 0 : i32
    %c0_i32_0 = arith.constant 0 : i32
    %c0_i32_1 = arith.constant 0 : i32
    return %c0_i32, %c0_i32_0 : i32, i32
  }
  func.func @transform_3(%arg0: i32) -> (i32, i32) {
    %c0_i32 = arith.constant 0 : i32
    %c0_i32_0 = arith.constant 0 : i32
    %c0_i32_1 = arith.constant 0 : i32
    return %c0_i32, %c0_i32_0 : i32, i32
  }
  func.func @transform_4(%arg0: i32) -> (i32, i32) {
    %c0_i32 = arith.constant 0 : i32
    %c0_i32_0 = arith.constant 0 : i32
    %c0_i32_1 = arith.constant 0 : i32
    return %c0_i32, %c0_i32_0 : i32, i32
  }
  func.func @transform_5(%arg0: i32) -> (i32, i32) {
    %c0_i32 = arith.constant 0 : i32
    %c0_i32_0 = arith.constant 0 : i32
    %c0_i32_1 = arith.constant 0 : i32
    return %c0_i32, %c0_i32_0 : i32, i32
  }
  func.func @transform_6(%arg0: i32) -> (i32, i32) {
    %c0_i32 = arith.constant 0 : i32
    %c0_i32_0 = arith.constant 0 : i32
    %c0_i32_1 = arith.constant 0 : i32
    return %c0_i32, %c0_i32_0 : i32, i32
  }
  func.func @transform_7(%arg0: i32) -> (i32, i32) {
    %c0_i32 = arith.constant 0 : i32
    %c0_i32_0 = arith.constant 0 : i32
    %c0_i32_1 = arith.constant 0 : i32
    return %c0_i32, %c0_i32_0 : i32, i32
  }
  func.func @transform_8(%arg0: i32) -> (i32, i32) {
    %c0_i32 = arith.constant 0 : i32
    %c0_i32_0 = arith.constant 0 : i32
    %c0_i32_1 = arith.constant 0 : i32
    return %c0_i32, %c0_i32_0 : i32, i32
  }
  func.func @transform_9(%arg0: i32) -> (i32, i32) {
    %c0_i32 = arith.constant 0 : i32
    %c0_i32_0 = arith.constant 0 : i32
    %c0_i32_1 = arith.constant 0 : i32
    return %c0_i32, %c0_i32_0 : i32, i32
  }
  func.func @transform_10(%arg0: i32) -> (i32, i32) {
    %c0_i32 = arith.constant 0 : i32
    %c0_i32_0 = arith.constant 0 : i32
    %c0_i32_1 = arith.constant 0 : i32
    return %c0_i32, %c0_i32_0 : i32, i32
  }
  func.func @transform_11(%arg0: i32) -> (i32, i32) {
    %c0_i32 = arith.constant 0 : i32
    %c0_i32_0 = arith.constant 0 : i32
    return %arg0, %c0_i32 : i32, i32
  }
}

</mosaic_0001>

<bundles_post_ra>
// kernel: mednet_forward.1
= control target key start
LH: loop header
LB: loop body
LE: loop exit
PB: predicated region body
PF: predicated region fallthrough
CT: control target
= control target key end

     0   :  { %16 = vsyncpa [#allocation3], 0  ;;  %s1570_s0 = inlined_call_operand.vmem [shape: f32[8,256], index: 0, kind: input, shape index: {}]   ;;  %s1571_s1 = inlined_call_operand.hbm [shape: f32[256,512], index: 1, kind: input, shape index: {}]   ;;  %s1572_s2 = inlined_call_operand.vmem [shape: f32[1,512], index: 2, kind: input, shape index: {}]   ;;  %s1573_s3 = inlined_call_operand.hbm [shape: f32[512,256], index: 3, kind: input, shape index: {}]   ;;  %s1574_s4 = inlined_call_operand.vmem [shape: f32[1,256], index: 4, kind: input, shape index: {}]   ;;  %s1575_s5 = inlined_call_operand.hbm [shape: f32[256,512], index: 5, kind: input, shape index: {}]   ;;  %s1576_s6 = inlined_call_operand.vmem [shape: f32[1,512], index: 6, kind: input, shape index: {}]   ;;  %s1577_s7 = inlined_call_operand.hbm [shape: f32[512,128], index: 7, kind: input, shape index: {}]   ;;  %s1578_s8 = inlined_call_operand.vmem [shape: f32[1,128], index: 8, kind: input, shape index: {}]   ;;  %s1579_s9 = inlined_call_operand.hbm [shape: f32[128,128], index: 9, kind: input, shape index: {}]   ;;  %s1580_s10 = inlined_call_operand.vmem [shape: f32[1,128], index: 10, kind: input, shape index: {}]   ;;  %s1581_s11 = inlined_call_operand.vmem [shape: f32[8,128], index: 11, kind: output, shape index: {}]  }
   0x1   :  { %17 = vsyncpa [#allocation5], 0  ;;  %s40_s19 = sshll.u32 %s1573_s3, 4  ;;  %s41_s19 = int_to_ptr.hbm [resolvable:$true] %s40_s19 }
   0x2   :  { %18 = vsyncpa [#allocation8], 0  ;;  %s1442_s20 = smov [#allocation4]   ;;  %s70_s24 = sshll.u32 %s1577_s7, 4  ;;  %s71_s24 = int_to_ptr.hbm [resolvable:$true] %s70_s24 }
   0x3   :  { %s42_s21 = sshll.u32 %s1442_s20, 4  ;;  %s1443_s25 = smov 256   ;;  %s43_s21 = int_to_ptr.vmem [resolvable:$true] %s42_s21 }
   0x4   :  { %s1444_s26 = smov 16   ;;  %s1445_s27 = smov [#allocation7]  }
   0x5   :  { %48 = dma.hbm_to_vmem [thread:$0]  %s41_s19, 16384, %s43_s21, [#allocation5], %s1443_s25, %s1443_s25, %s1444_s26  }
   0x6   :  { %s72_s28 = sshll.u32 %s1445_s27, 4  ;;  %s1446_s29 = smov 128   ;;  %s73_s28 = int_to_ptr.vmem [resolvable:$true] %s72_s28 }
   0x7   :  { %s1447_s30 = smov 8   ;;  %s25_s13 = sshll.u32 %s1571_s1, 4  ;;  %s26_s13 = int_to_ptr.hbm [resolvable:$true] %s25_s13 }
   0x8   :  { %78 = dma.hbm_to_vmem [thread:$0]  %s71_s24, 8192, %s73_s28, [#allocation8], %s1446_s29, %s1446_s29, %s1447_s30  }
   0x9   :  { %s1448_s14 = smov [#allocation2]   ;;  %s55_s17 = sshll.u32 %s1575_s5, 4  ;;  %s56_s17 = int_to_ptr.hbm [resolvable:$true] %s55_s17 }
   0xa   :  { %s27_s15 = sshll.u32 %s1448_s14, 4  ;;  %s1449_s18 = smov 512   ;;  %s28_s15 = int_to_ptr.vmem [resolvable:$true] %s27_s15 }
   0xb   :  { %s1450_s19 = smov 32   ;;  %s1451_s20 = smov [#allocation6]  }
   0xc   :  { %33 = dma.hbm_to_vmem [thread:$0]  %s26_s13, 16384, %s28_s15, [#allocation3], %s1449_s18, %s1449_s18, %s1450_s19  }
   0xd   :  { %s57_s21 = sshll.u32 %s1451_s20, 4  ;;  %s85_s24 = sshll.u32 %s1579_s9, 4  ;;  %s58_s21 = int_to_ptr.vmem [resolvable:$true] %s57_s21  ;;  %s86_s24 = int_to_ptr.hbm [resolvable:$true] %s85_s24 }
   0xe   :  { %63 = dma.hbm_to_vmem [thread:$0]  %s56_s17, 16384, %s58_s21, [#allocation5], %s1449_s18, %s1449_s18, %s1450_s19  }
   0xf   :  { %s1452_s1 = smov [#allocation9]  }
  0x10   :  { %s87_s25 = sshll.u32 %s1452_s1, 4  ;;  %s88_s25 = int_to_ptr.vmem [resolvable:$true] %s87_s25 }
  0x11   :  { %93 = dma.hbm_to_vmem [thread:$0]  %s86_s24, 2048, %s88_s25, [#allocation8], %s1446_s29, %s1446_s29, %s1447_s30  }
  0x12   :  { %1436 = dma.done.wait [#allocation3], 16384  }
  0x13   :  { %1437 = vsyncadd [#allocation3], 4294950912 }
  0x14   :  { %1438 = dma.done.wait [#allocation5], 32768  }
  0x15   :  { %1439 = vsyncadd [#allocation5], 4294934528 }
  0x16   :  { %1440 = dma.done.wait [#allocation8], 10240  }
  0x17   :  { %1441 = vsyncadd [#allocation8], 4294957056  ;;  %v178_v0 = vld [vmem:[#allocation2 + $0x1e0] sm:$0xff]  ;;  %v179_v1 = vld [vmem:[#allocation2 + $0x1e8] sm:$0xff] }
  0x18   :  { %v174_v2 = vld [vmem:[#allocation2 + $0x1c0] sm:$0xff]  ;;  %256 = vmatpush.msra.mxu0 %v178_v0  ;;  %296 = vmatpush.msra.mxu2 %v179_v1  ;;  %v175_v4 = vld [vmem:[#allocation2 + $0x1c8] sm:$0xff]  ;;  %v180_v62 = vld [vmem:[#allocation2 + $0x1f0] sm:$0xff] }
  0x19   :  { %v242_v3 = vld [vmem:[#allocation2 + $0x3e0] sm:$0xff]  ;;  %v243_v5 = vld [vmem:[#allocation2 + $0x3e8] sm:$0xff]  ;;  %v181_v63 = vld [vmem:[#allocation2 + $0x1f8] sm:$0xff] }
  0x1a   :  { %276 = vmatpush.msra.mxu1 %v242_v3  ;;  %316 = vmatpush.msra.mxu3 %v243_v5  ;;  %v170_v6 = vld [vmem:[#allocation2 + $0x1a0] sm:$0xff]  ;;  %v171_v8 = vld [vmem:[#allocation2 + $0x1a8] sm:$0xff]  ;;  %v176_v3 = vld [vmem:[#allocation2 + $0x1d0] sm:$0xff] }
  0x1b   :  { %v238_v7 = vld [vmem:[#allocation2 + $0x3c0] sm:$0xff]  ;;  %257 = vmatpush.msra.mxu0 %v174_v2  ;;  %297 = vmatpush.msra.mxu2 %v175_v4  ;;  %v239_v9 = vld [vmem:[#allocation2 + $0x3c8] sm:$0xff]  ;;  %v244_v4 = vld [vmem:[#allocation2 + $0x3f0] sm:$0xff] }
  0x1c   :  { %v234_v10 = vld [vmem:[#allocation2 + $0x3a0] sm:$0xff]  ;;  %277 = vmatpush.msra.mxu1 %v238_v7  ;;  %317 = vmatpush.msra.mxu3 %v239_v9  ;;  %v167_v12 = vld [vmem:[#allocation2 + $0x188] sm:$0xff]  ;;  %v177_v5 = vld [vmem:[#allocation2 + $0x1d8] sm:$0xff] }
  0x1d   :  { %v166_v11 = vld [vmem:[#allocation2 + $0x180] sm:$0xff]  ;;  %v235_v13 = vld [vmem:[#allocation2 + $0x3a8] sm:$0xff]  ;;  %258 = vmatpush.msra.mxu0 %v170_v6  ;;  %298 = vmatpush.msra.mxu2 %v171_v8  ;;  %v245_v6 = vld [vmem:[#allocation2 + $0x3f8] sm:$0xff] }
  0x1e   :  { %v230_v14 = vld [vmem:[#allocation2 + $0x380] sm:$0xff]  ;;  %v231_v15 = vld [vmem:[#allocation2 + $0x388] sm:$0xff]  ;;  %278 = vmatpush.msra.mxu1 %v234_v10  ;;  %318 = vmatpush.msra.mxu3 %v235_v13  ;;  %v172_v7 = vld [vmem:[#allocation2 + $0x1b0] sm:$0xff] }
  0x1f   :  { %v162_v16 = vld [vmem:[#allocation2 + $0x160] sm:$0xff]  ;;  %v163_v17 = vld [vmem:[#allocation2 + $0x168] sm:$0xff]  ;;  %259 = vmatpush.msra.mxu0 %v166_v11  ;;  %299 = vmatpush.msra.mxu2 %v167_v12  ;;  %v240_v9 = vld [vmem:[#allocation2 + $0x3d0] sm:$0xff] }
  0x20   :  { %v226_v18 = vld [vmem:[#allocation2 + $0x360] sm:$0xff]  ;;  %v227_v19 = vld [vmem:[#allocation2 + $0x368] sm:$0xff]  ;;  %279 = vmatpush.msra.mxu1 %v230_v14  ;;  %319 = vmatpush.msra.mxu3 %v231_v15  ;;  %v173_v10 = vld [vmem:[#allocation2 + $0x1b8] sm:$0xff] }
  0x21   :  { %v158_v20 = vld [vmem:[#allocation2 + $0x140] sm:$0xff]  ;;  %v159_v21 = vld [vmem:[#allocation2 + $0x148] sm:$0xff]  ;;  %260 = vmatpush.msra.mxu0 %v162_v16  ;;  %300 = vmatpush.msra.mxu2 %v163_v17  ;;  %v241_v11 = vld [vmem:[#allocation2 + $0x3d8] sm:$0xff] }
  0x22   :  { %v222_v22 = vld [vmem:[#allocation2 + $0x340] sm:$0xff]  ;;  %v223_v23 = vld [vmem:[#allocation2 + $0x348] sm:$0xff]  ;;  %280 = vmatpush.msra.mxu1 %v226_v18  ;;  %320 = vmatpush.msra.mxu3 %v227_v19  ;;  %v236_v12 = vld [vmem:[#allocation2 + $0x3b0] sm:$0xff] }
  0x23   :  { %v154_v24 = vld [vmem:[#allocation2 + $0x120] sm:$0xff]  ;;  %v155_v25 = vld [vmem:[#allocation2 + $0x128] sm:$0xff]  ;;  %261 = vmatpush.msra.mxu0 %v158_v20  ;;  %301 = vmatpush.msra.mxu2 %v159_v21  ;;  %v168_v13 = vld [vmem:[#allocation2 + $0x190] sm:$0xff] }
  0x24   :  { %v218_v26 = vld [vmem:[#allocation2 + $0x320] sm:$0xff]  ;;  %v219_v27 = vld [vmem:[#allocation2 + $0x328] sm:$0xff]  ;;  %281 = vmatpush.msra.mxu1 %v222_v22  ;;  %321 = vmatpush.msra.mxu3 %v223_v23  ;;  %v169_v14 = vld [vmem:[#allocation2 + $0x198] sm:$0xff] }
  0x25   :  { %v150_v28 = vld [vmem:[#allocation2 + $0x100] sm:$0xff]  ;;  %v151_v29 = vld [vmem:[#allocation2 + $0x108] sm:$0xff]  ;;  %262 = vmatpush.msra.mxu0 %v154_v24  ;;  %302 = vmatpush.msra.mxu2 %v155_v25  ;;  %v237_v15 = vld [vmem:[#allocation2 + $0x3b8] sm:$0xff] }
  0x26   :  { %v214_v30 = vld [vmem:[#allocation2 + $0x300] sm:$0xff]  ;;  %v215_v31 = vld [vmem:[#allocation2 + $0x308] sm:$0xff]  ;;  %282 = vmatpush.msra.mxu1 %v218_v26  ;;  %322 = vmatpush.msra.mxu3 %v219_v27  ;;  %v164_v16 = vld [vmem:[#allocation2 + $0x170] sm:$0xff] }
  0x27   :  { %v146_v32 = vld [vmem:[#allocation2 + $0xe0] sm:$0xff]  ;;  %v147_v33 = vld [vmem:[#allocation2 + $0xe8] sm:$0xff]  ;;  %263 = vmatpush.msra.mxu0 %v150_v28  ;;  %303 = vmatpush.msra.mxu2 %v151_v29  ;;  %v232_v17 = vld [vmem:[#allocation2 + $0x390] sm:$0xff] }
  0x28   :  { %v210_v34 = vld [vmem:[#allocation2 + $0x2e0] sm:$0xff]  ;;  %v211_v35 = vld [vmem:[#allocation2 + $0x2e8] sm:$0xff]  ;;  %283 = vmatpush.msra.mxu1 %v214_v30  ;;  %323 = vmatpush.msra.mxu3 %v215_v31  ;;  %v165_v18 = vld [vmem:[#allocation2 + $0x178] sm:$0xff] }
  0x29   :  { %v142_v36 = vld [vmem:[#allocation2 + $0xc0] sm:$0xff]  ;;  %v143_v37 = vld [vmem:[#allocation2 + $0xc8] sm:$0xff]  ;;  %264 = vmatpush.msra.mxu0 %v146_v32  ;;  %304 = vmatpush.msra.mxu2 %v147_v33  ;;  %v233_v19 = vld [vmem:[#allocation2 + $0x398] sm:$0xff] }
  0x2a   :  { %v206_v38 = vld [vmem:[#allocation2 + $0x2c0] sm:$0xff]  ;;  %v207_v39 = vld [vmem:[#allocation2 + $0x2c8] sm:$0xff]  ;;  %284 = vmatpush.msra.mxu1 %v210_v34  ;;  %324 = vmatpush.msra.mxu3 %v211_v35  ;;  %v160_v20 = vld [vmem:[#allocation2 + $0x150] sm:$0xff] }
  0x2b   :  { %v138_v40 = vld [vmem:[#allocation2 + $0xa0] sm:$0xff]  ;;  %v139_v41 = vld [vmem:[#allocation2 + $0xa8] sm:$0xff]  ;;  %265 = vmatpush.msra.mxu0 %v142_v36  ;;  %305 = vmatpush.msra.mxu2 %v143_v37  ;;  %v228_v21 = vld [vmem:[#allocation2 + $0x370] sm:$0xff] }
  0x2c   :  { %v202_v42 = vld [vmem:[#allocation2 + $0x2a0] sm:$0xff]  ;;  %v203_v43 = vld [vmem:[#allocation2 + $0x2a8] sm:$0xff]  ;;  %285 = vmatpush.msra.mxu1 %v206_v38  ;;  %325 = vmatpush.msra.mxu3 %v207_v39  ;;  %v161_v22 = vld [vmem:[#allocation2 + $0x158] sm:$0xff] }
  0x2d   :  { %v134_v44 = vld [vmem:[#allocation2 + $0x80] sm:$0xff]  ;;  %v135_v45 = vld [vmem:[#allocation2 + $0x88] sm:$0xff]  ;;  %266 = vmatpush.msra.mxu0 %v138_v40  ;;  %306 = vmatpush.msra.mxu2 %v139_v41  ;;  %v229_v23 = vld [vmem:[#allocation2 + $0x378] sm:$0xff] }
  0x2e   :  { %v198_v46 = vld [vmem:[#allocation2 + $0x280] sm:$0xff]  ;;  %v199_v47 = vld [vmem:[#allocation2 + $0x288] sm:$0xff]  ;;  %286 = vmatpush.msra.mxu1 %v202_v42  ;;  %326 = vmatpush.msra.mxu3 %v203_v43  ;;  %v156_v24 = vld [vmem:[#allocation2 + $0x130] sm:$0xff] }
  0x2f   :  { %v130_v48 = vld [vmem:[#allocation2 + $0x60] sm:$0xff]  ;;  %v131_v49 = vld [vmem:[#allocation2 + $0x68] sm:$0xff]  ;;  %267 = vmatpush.msra.mxu0 %v134_v44  ;;  %307 = vmatpush.msra.mxu2 %v135_v45  ;;  %v224_v25 = vld [vmem:[#allocation2 + $0x350] sm:$0xff] }
  0x30   :  { %v194_v50 = vld [vmem:[#allocation2 + $0x260] sm:$0xff]  ;;  %v195_v51 = vld [vmem:[#allocation2 + $0x268] sm:$0xff]  ;;  %287 = vmatpush.msra.mxu1 %v198_v46  ;;  %327 = vmatpush.msra.mxu3 %v199_v47  ;;  %v157_v26 = vld [vmem:[#allocation2 + $0x138] sm:$0xff] }
  0x31   :  { %v126_v52 = vld [vmem:[#allocation2 + $0x40] sm:$0xff]  ;;  %v127_v53 = vld [vmem:[#allocation2 + $0x48] sm:$0xff]  ;;  %268 = vmatpush.msra.mxu0 %v130_v48  ;;  %308 = vmatpush.msra.mxu2 %v131_v49  ;;  %v225_v27 = vld [vmem:[#allocation2 + $0x358] sm:$0xff] }
  0x32   :  { %v190_v54 = vld [vmem:[#allocation2 + $0x240] sm:$0xff]  ;;  %v191_v55 = vld [vmem:[#allocation2 + $0x248] sm:$0xff]  ;;  %288 = vmatpush.msra.mxu1 %v194_v50  ;;  %328 = vmatpush.msra.mxu3 %v195_v51  ;;  %v152_v28 = vld [vmem:[#allocation2 + $0x110] sm:$0xff] }
  0x33   :  { %v122_v56 = vld [vmem:[#allocation2 + $0x20] sm:$0xff]  ;;  %v123_v57 = vld [vmem:[#allocation2 + $0x28] sm:$0xff]  ;;  %269 = vmatpush.msra.mxu0 %v126_v52  ;;  %309 = vmatpush.msra.mxu2 %v127_v53  ;;  %v220_v29 = vld [vmem:[#allocation2 + $0x330] sm:$0xff] }
  0x34   :  { %v186_v58 = vld [vmem:[#allocation2 + $0x220] sm:$0xff]  ;;  %v187_v59 = vld [vmem:[#allocation2 + $0x228] sm:$0xff]  ;;  %289 = vmatpush.msra.mxu1 %v190_v54  ;;  %329 = vmatpush.msra.mxu3 %v191_v55  ;;  %v153_v30 = vld [vmem:[#allocation2 + $0x118] sm:$0xff] }
  0x35   :  { %v118_v60 = vld [vmem:[#allocation2] sm:$0xff]  ;;  %v119_v61 = vld [vmem:[#allocation2 + $0x8] sm:$0xff]  ;;  %270 = vmatpush.msra.mxu0 %v122_v56  ;;  %310 = vmatpush.msra.mxu2 %v123_v57  ;;  %v221_v31 = vld [vmem:[#allocation2 + $0x338] sm:$0xff] }
  0x36   :  { %290 = vmatpush.msra.mxu1 %v186_v58  ;;  %330 = vmatpush.msra.mxu3 %v187_v59  ;;  %v182_v0 = vld [vmem:[#allocation2 + $0x200] sm:$0xff]  ;;  %v183_v1 = vld [vmem:[#allocation2 + $0x208] sm:$0xff]  ;;  %v148_v32 = vld [vmem:[#allocation2 + $0xf0] sm:$0xff] }
  0x37   :  { %271 = vmatpush.msra.mxu0 %v118_v60  ;;  %311 = vmatpush.msra.mxu2 %v119_v61  ;;  %v1531_v2 = vld [vmem:[%s1570_s0] sm:$0xff]  ;;  %v1537_v8 = vld [vmem:[%s1570_s0 + $0x8] sm:$0xff]  ;;  %v216_v33 = vld [vmem:[#allocation2 + $0x310] sm:$0xff] }
  0x38   :  { %291 = vmatpush.msra.mxu1 %v182_v0  ;;  %331 = vmatpush.msra.mxu3 %v183_v1  ;;  %v149_v34 = vld [vmem:[#allocation2 + $0xf8] sm:$0xff]  ;;  %v144_v36 = vld [vmem:[#allocation2 + $0xd0] sm:$0xff] }
  0x39   :  { %336 = vmatpush.msrb.mxu0 %v180_v62  ;;  %376 = vmatpush.msrb.mxu2 %v181_v63  ;;  %v217_v35 = vld [vmem:[#allocation2 + $0x318] sm:$0xff]  ;;  %v212_v37 = vld [vmem:[#allocation2 + $0x2f0] sm:$0xff] }
  0x3a   :  { %312 = vmatmul.f32.vlgmr.msra.gmra.mxu2 %v1531_v2  ;;  %356 = vmatpush.msrb.mxu1 %v244_v4  ;;  %v145_v38 = vld [vmem:[#allocation2 + $0xd8] sm:$0xff]  ;;  %v140_v40 = vld [vmem:[#allocation2 + $0xb0] sm:$0xff] }
  0x3b   :  { %337 = vmatpush.msrb.mxu0 %v176_v3  ;;  %377 = vmatpush.msrb.mxu2 %v177_v5  ;;  %v213_v39 = vld [vmem:[#allocation2 + $0x2f8] sm:$0xff]  ;;  %v208_v41 = vld [vmem:[#allocation2 + $0x2d0] sm:$0xff] }
  0x3c   :  { %396 = vmatpush.msrb.mxu3 %v245_v6  ;;  %357 = vmatpush.msrb.mxu1 %v240_v9  ;;  %v141_v42 = vld [vmem:[#allocation2 + $0xb8] sm:$0xff]  ;;  %v136_v44 = vld [vmem:[#allocation2 + $0x90] sm:$0xff]  ;;  %v500_v9 = vld [vmem:[#allocation4 + $0x1e0] sm:$0xff] }
  0x3d   :  { %338 = vmatpush.msrb.mxu0 %v172_v7  ;;  %332 = vmatmul.f32.vlgmr.msra.gmra.mxu3 %v1537_v8  ;;  %v209_v43 = vld [vmem:[#allocation2 + $0x2d8] sm:$0xff]  ;;  %v204_v45 = vld [vmem:[#allocation2 + $0x2b0] sm:$0xff]  ;;  %v468_v7 = vld [vmem:[#allocation4 + $0xe0] sm:$0xff] }
  0x3e   :  { %378 = vmatpush.msrb.mxu2 %v173_v10  ;;  %397 = vmatpush.msrb.mxu3 %v241_v11  ;;  %v137_v46 = vld [vmem:[#allocation2 + $0x98] sm:$0xff]  ;;  %v132_v48 = vld [vmem:[#allocation2 + $0x70] sm:$0xff]  ;;  %v532_v10 = vld [vmem:[#allocation4 + $0x2e0] sm:$0xff] }
  0x3f   :  { %272 = vmatmul.f32.vlgmr.msra.gmra.mxu0 %v1531_v2  ;;  %358 = vmatpush.msrb.mxu1 %v236_v12  ;;  %v205_v47 = vld [vmem:[#allocation2 + $0x2b8] sm:$0xff]  ;;  %v200_v49 = vld [vmem:[#allocation2 + $0x290] sm:$0xff]  ;;  %v564_v11 = vld [vmem:[#allocation4 + $0x3e0] sm:$0xff] }
  0x40   :  { %339 = vmatpush.msrb.mxu0 %v168_v13  ;;  %379 = vmatpush.msrb.mxu2 %v169_v14  ;;  %v133_v50 = vld [vmem:[#allocation2 + $0x78] sm:$0xff]  ;;  %v128_v52 = vld [vmem:[#allocation2 + $0x50] sm:$0xff]  ;;  %v464_v14 = vld [vmem:[#allocation4 + $0xc0] sm:$0xff] }
  0x41   :  { %398 = vmatpush.msrb.mxu3 %v237_v15  ;;  %292 = vmatmul.f32.vlgmr.msra.gmra.mxu1 %v1537_v8  ;;  %v201_v51 = vld [vmem:[#allocation2 + $0x298] sm:$0xff]  ;;  %v196_v53 = vld [vmem:[#allocation2 + $0x270] sm:$0xff]  ;;  %v496_v15 = vld [vmem:[#allocation4 + $0x1c0] sm:$0xff] }
  0x42   :  { %340 = vmatpush.msrb.mxu0 %v164_v16  ;;  %359 = vmatpush.msrb.mxu1 %v232_v17  ;;  %v129_v54 = vld [vmem:[#allocation2 + $0x58] sm:$0xff]  ;;  %v124_v56 = vld [vmem:[#allocation2 + $0x30] sm:$0xff] }
  0x43   :  { %380 = vmatpush.msrb.mxu2 %v165_v18  ;;  %399 = vmatpush.msrb.mxu3 %v233_v19  ;;  %v197_v55 = vld [vmem:[#allocation2 + $0x278] sm:$0xff]  ;;  %v192_v57 = vld [vmem:[#allocation2 + $0x250] sm:$0xff]  ;;  %v460_v19 = vld [vmem:[#allocation4 + $0xa0] sm:$0xff] }
  0x44   :  { %341 = vmatpush.msrb.mxu0 %v160_v20  ;;  %360 = vmatpush.msrb.mxu1 %v228_v21  ;;  %v125_v58 = vld [vmem:[#allocation2 + $0x38] sm:$0xff]  ;;  %v120_v60 = vld [vmem:[#allocation2 + $0x10] sm:$0xff]  ;;  %v492_v20 = vld [vmem:[#allocation4 + $0x1a0] sm:$0xff] }
  0x45   :  { %381 = vmatpush.msrb.mxu2 %v161_v22  ;;  %400 = vmatpush.msrb.mxu3 %v229_v23  ;;  %v193_v59 = vld [vmem:[#allocation2 + $0x258] sm:$0xff]  ;;  %v188_v61 = vld [vmem:[#allocation2 + $0x230] sm:$0xff]  ;;  %v456_v23 = vld [vmem:[#allocation4 + $0x80] sm:$0xff] }
  0x46   :  { %342 = vmatpush.msrb.mxu0 %v156_v24  ;;  %361 = vmatpush.msrb.mxu1 %v224_v25  ;;  %v121_v62 = vld [vmem:[#allocation2 + $0x18] sm:$0xff]  ;;  %v184_v0 = vld [vmem:[#allocation2 + $0x210] sm:$0xff]  ;;  %v488_v24 = vld [vmem:[#allocation4 + $0x180] sm:$0xff] }
  0x47   :  { %382 = vmatpush.msrb.mxu2 %v157_v26  ;;  %401 = vmatpush.msrb.mxu3 %v225_v27  ;;  %v189_v63 = vld [vmem:[#allocation2 + $0x238] sm:$0xff]  ;;  %v470_v3 = vld [vmem:[#allocation4 + $0xf0] sm:$0xff]  ;;  %v452_v27 = vld [vmem:[#allocation4 + $0x60] sm:$0xff] }
  0x48   :  { %343 = vmatpush.msrb.mxu0 %v152_v28  ;;  %362 = vmatpush.msrb.mxu1 %v220_v29  ;;  %v185_v1 = vld [vmem:[#allocation2 + $0x218] sm:$0xff]  ;;  %v502_v4 = vld [vmem:[#allocation4 + $0x1f0] sm:$0xff]  ;;  %v484_v28 = vld [vmem:[#allocation4 + $0x160] sm:$0xff] }
  0x49   :  { %383 = vmatpush.msrb.mxu2 %v153_v30  ;;  %402 = vmatpush.msrb.mxu3 %v221_v31  ;;  %v534_v5 = vld [vmem:[#allocation4 + $0x2f0] sm:$0xff]  ;;  %v448_v31 = vld [vmem:[#allocation4 + $0x40] sm:$0xff] }
  0x4a   :  { %344 = vmatpush.msrb.mxu0 %v148_v32  ;;  %363 = vmatpush.msrb.mxu1 %v216_v33  ;;  %v566_v6 = vld [vmem:[#allocation4 + $0x3f0] sm:$0xff]  ;;  %v480_v32 = vld [vmem:[#allocation4 + $0x140] sm:$0xff] }
  0x4b   :  { %384 = vmatpush.msrb.mxu2 %v149_v34  ;;  %403 = vmatpush.msrb.mxu3 %v217_v35  ;;  %v466_v12 = vld [vmem:[#allocation4 + $0xd0] sm:$0xff]  ;;  %v444_v35 = vld [vmem:[#allocation4 + $0x20] sm:$0xff] }
  0x4c   :  { %345 = vmatpush.msrb.mxu0 %v144_v36  ;;  %364 = vmatpush.msrb.mxu1 %v212_v37  ;;  %v498_v13 = vld [vmem:[#allocation4 + $0x1d0] sm:$0xff]  ;;  %v476_v36 = vld [vmem:[#allocation4 + $0x120] sm:$0xff] }
  0x4d   :  { %385 = vmatpush.msrb.mxu2 %v145_v38  ;;  %404 = vmatpush.msrb.mxu3 %v213_v39  ;;  %v462_v16 = vld [vmem:[#allocation4 + $0xb0] sm:$0xff]  ;;  %v440_v39 = vld [vmem:[#allocation4] sm:$0xff] }
  0x4e   :  { %346 = vmatpush.msrb.mxu0 %v140_v40  ;;  %365 = vmatpush.msrb.mxu1 %v208_v41  ;;  %v494_v17 = vld [vmem:[#allocation4 + $0x1b0] sm:$0xff]  ;;  %v472_v40 = vld [vmem:[#allocation4 + $0x100] sm:$0xff]  ;;  %v471_v41 = vld [vmem:[#allocation4 + $0xf8] sm:$0xff] }
  0x4f   :  { %386 = vmatpush.msrb.mxu2 %v141_v42  ;;  %405 = vmatpush.msrb.mxu3 %v209_v43  ;;  %v526_v18 = vld [vmem:[#allocation4 + $0x2b0] sm:$0xff]  ;;  %v503_v42 = vld [vmem:[#allocation4 + $0x1f8] sm:$0xff]  ;;  %v469_v43 = vld [vmem:[#allocation4 + $0xe8] sm:$0xff] }
  0x50   :  { %347 = vmatpush.msrb.mxu0 %v136_v44  ;;  %366 = vmatpush.msrb.mxu1 %v204_v45  ;;  %v458_v21 = vld [vmem:[#allocation4 + $0x90] sm:$0xff]  ;;  %v524_v44 = vld [vmem:[#allocation4 + $0x2a0] sm:$0xff] }
  0x51   :  { %387 = vmatpush.msrb.mxu2 %v137_v46  ;;  %406 = vmatpush.msrb.mxu3 %v205_v47  ;;  %v490_v22 = vld [vmem:[#allocation4 + $0x190] sm:$0xff]  ;;  %v467_v46 = vld [vmem:[#allocation4 + $0xd8] sm:$0xff]  ;;  %v501_v47 = vld [vmem:[#allocation4 + $0x1e8] sm:$0xff] }
  0x52   :  { %348 = vmatpush.msrb.mxu0 %v132_v48  ;;  %367 = vmatpush.msrb.mxu1 %v200_v49  ;;  %v454_v25 = vld [vmem:[#allocation4 + $0x70] sm:$0xff]  ;;  %v560_v49 = vld [vmem:[#allocation4 + $0x3c0] sm:$0xff] }
  0x53   :  { %388 = vmatpush.msrb.mxu2 %v133_v50  ;;  %407 = vmatpush.msrb.mxu3 %v201_v51  ;;  %v486_v26 = vld [vmem:[#allocation4 + $0x170] sm:$0xff]  ;;  %v465_v50 = vld [vmem:[#allocation4 + $0xc8] sm:$0xff]  ;;  %v499_v51 = vld [vmem:[#allocation4 + $0x1d8] sm:$0xff] }
  0x54   :  { %349 = vmatpush.msrb.mxu0 %v128_v52  ;;  %368 = vmatpush.msrb.mxu1 %v196_v53  ;;  %v450_v29 = vld [vmem:[#allocation4 + $0x50] sm:$0xff]  ;;  %v520_v52 = vld [vmem:[#allocation4 + $0x280] sm:$0xff] }
  0x55   :  { %389 = vmatpush.msrb.mxu2 %v129_v54  ;;  %408 = vmatpush.msrb.mxu3 %v197_v55  ;;  %v482_v30 = vld [vmem:[#allocation4 + $0x150] sm:$0xff]  ;;  %v463_v54 = vld [vmem:[#allocation4 + $0xb8] sm:$0xff]  ;;  %v497_v55 = vld [vmem:[#allocation4 + $0x1c8] sm:$0xff] }
  0x56   :  { %350 = vmatpush.msrb.mxu0 %v124_v56  ;;  %369 = vmatpush.msrb.mxu1 %v192_v57  ;;  %v446_v33 = vld [vmem:[#allocation4 + $0x30] sm:$0xff]  ;;  %v556_v57 = vld [vmem:[#allocation4 + $0x3a0] sm:$0xff] }
  0x57   :  { %390 = vmatpush.msrb.mxu2 %v125_v58  ;;  %409 = vmatpush.msrb.mxu3 %v193_v59  ;;  %v478_v34 = vld [vmem:[#allocation4 + $0x130] sm:$0xff]  ;;  %v461_v58 = vld [vmem:[#allocation4 + $0xa8] sm:$0xff]  ;;  %v495_v59 = vld [vmem:[#allocation4 + $0x1b8] sm:$0xff] }
  0x58   :  { %351 = vmatpush.msrb.mxu0 %v120_v60  ;;  %370 = vmatpush.msrb.mxu1 %v188_v61  ;;  %v442_v37 = vld [vmem:[#allocation4 + $0x10] sm:$0xff]  ;;  %v516_v60 = vld [vmem:[#allocation4 + $0x260] sm:$0xff] }
  0x59   :  { %391 = vmatpush.msrb.mxu2 %v121_v62  ;;  %410 = vmatpush.msrb.mxu3 %v189_v63  ;;  %v474_v38 = vld [vmem:[#allocation4 + $0x110] sm:$0xff]  ;;  %v459_v62 = vld [vmem:[#allocation4 + $0x98] sm:$0xff]  ;;  %v493_v63 = vld [vmem:[#allocation4 + $0x1a8] sm:$0xff] }
  0x5a   :  { %352 = vmatmul.f32.vlgmr.msrb.gmra.mxu0 %v1531_v2  ;;  %392 = vmatmul.f32.vlgmr.msrb.gmra.mxu2 %v1531_v2  ;;  %v530_v2 = vld [vmem:[#allocation4 + $0x2d0] sm:$0xff] }
  0x5b   :  { %371 = vmatpush.msrb.mxu1 %v184_v0  ;;  %411 = vmatpush.msrb.mxu3 %v185_v1  ;;  %v562_v45 = vld [vmem:[#allocation4 + $0x3d0] sm:$0xff]  ;;  %v552_v1 = vld [vmem:[#allocation4 + $0x380] sm:$0xff] }
  0x5c   :  { %372 = vmatmul.f32.vlgmr.msrb.gmra.mxu1 %v1537_v8  ;;  %412 = vmatmul.f32.vlgmr.msrb.gmra.mxu3 %v1537_v8  ;;  %v528_v8 = vld [vmem:[#allocation4 + $0x2c0] sm:$0xff]  ;;  %v522_v48 = vld [vmem:[#allocation4 + $0x290] sm:$0xff] }
  0x5d   :  { %574 = vmatpush.msra.mxu0 %v470_v3  ;;  %594 = vmatpush.msra.mxu1 %v502_v4  ;;  %v558_v53 = vld [vmem:[#allocation4 + $0x3b0] sm:$0xff]  ;;  %v457_v3 = vld [vmem:[#allocation4 + $0x88] sm:$0xff]  ;;  %v491_v4 = vld [vmem:[#allocation4 + $0x198] sm:$0xff] }
  0x5e   :  { %614 = vmatpush.msra.mxu2 %v534_v5  ;;  %634 = vmatpush.msra.mxu3 %v566_v6  ;;  %v518_v56 = vld [vmem:[#allocation4 + $0x270] sm:$0xff]  ;;  %v512_v5 = vld [vmem:[#allocation4 + $0x240] sm:$0xff] }
  0x5f   :  { %575 = vmatpush.msra.mxu0 %v468_v7  ;;  %595 = vmatpush.msra.mxu1 %v500_v9  ;;  %v554_v61 = vld [vmem:[#allocation4 + $0x390] sm:$0xff]  ;;  %v455_v7 = vld [vmem:[#allocation4 + $0x78] sm:$0xff]  ;;  %v489_v9 = vld [vmem:[#allocation4 + $0x188] sm:$0xff] }
  0x60   :  { %615 = vmatpush.msra.mxu2 %v532_v10  ;;  %635 = vmatpush.msra.mxu3 %v564_v11  ;;  %v514_v0 = vld [vmem:[#allocation4 + $0x250] sm:$0xff]  ;;  %v548_v11 = vld [vmem:[#allocation4 + $0x360] sm:$0xff] }
  0x61   :  { %576 = vmatpush.msra.mxu0 %v466_v12  ;;  %596 = vmatpush.msra.mxu1 %v498_v13  ;;  %v550_v6 = vld [vmem:[#allocation4 + $0x370] sm:$0xff]  ;;  %v453_v12 = vld [vmem:[#allocation4 + $0x68] sm:$0xff]  ;;  %v487_v13 = vld [vmem:[#allocation4 + $0x178] sm:$0xff] }
  0x62   :  { %616 = vmatpush.msra.mxu2 %v530_v2  ;;  %636 = vmatpush.msra.mxu3 %v562_v45  ;;  %v510_v10 = vld [vmem:[#allocation4 + $0x230] sm:$0xff]  ;;  %v508_v2 = vld [vmem:[#allocation4 + $0x220] sm:$0xff]  ;;  %v525_v45 = vld [vmem:[#allocation4 + $0x2a8] sm:$0xff] }
  0x63   :  { %577 = vmatpush.msra.mxu0 %v464_v14  ;;  %597 = vmatpush.msra.mxu1 %v496_v15  ;;  %v546_v14 = vld [vmem:[#allocation4 + $0x350] sm:$0xff]  ;;  %v451_v15 = vld [vmem:[#allocation4 + $0x58] sm:$0xff] }
  0x64   :  { %617 = vmatpush.msra.mxu2 %v528_v8  ;;  %637 = vmatpush.msra.mxu3 %v560_v49  ;;  %v485_v8 = vld [vmem:[#allocation4 + $0x168] sm:$0xff] }
  0x65   :  { %578 = vmatpush.msra.mxu0 %v462_v16  ;;  %598 = vmatpush.msra.mxu1 %v494_v17  ;;  %v506_v16 = vld [vmem:[#allocation4 + $0x210] sm:$0xff]  ;;  %v544_v17 = vld [vmem:[#allocation4 + $0x340] sm:$0xff] }
  0x66   :  { %618 = vmatpush.msra.mxu2 %v526_v18  ;;  %638 = vmatpush.msra.mxu3 %v558_v53  ;;  %v449_v18 = vld [vmem:[#allocation4 + $0x48] sm:$0xff] }
  0x67   :  { %579 = vmatpush.msra.mxu0 %v460_v19  ;;  %599 = vmatpush.msra.mxu1 %v492_v20  ;;  %v483_v19 = vld [vmem:[#allocation4 + $0x158] sm:$0xff]  ;;  %v504_v20 = vld [vmem:[#allocation4 + $0x200] sm:$0xff] }
  0x68   :  { %619 = vmatpush.msra.mxu2 %v524_v44  ;;  %639 = vmatpush.msra.mxu3 %v556_v57 }
  0x69   :  { %580 = vmatpush.msra.mxu0 %v458_v21  ;;  %600 = vmatpush.msra.mxu1 %v490_v22  ;;  %v542_v21 = vld [vmem:[#allocation4 + $0x330] sm:$0xff]  ;;  %v447_v22 = vld [vmem:[#allocation4 + $0x38] sm:$0xff] }
  0x6a   :  { %620 = vmatpush.msra.mxu2 %v522_v48  ;;  %640 = vmatpush.msra.mxu3 %v554_v61 }
  0x6b   :  { %581 = vmatpush.msra.mxu0 %v456_v23  ;;  %601 = vmatpush.msra.mxu1 %v488_v24  ;;  %v481_v23 = vld [vmem:[#allocation4 + $0x148] sm:$0xff]  ;;  %v535_v24 = vld [vmem:[#allocation4 + $0x2f8] sm:$0xff] }
  0x6c   :  { %621 = vmatpush.msra.mxu2 %v520_v52  ;;  %641 = vmatpush.msra.mxu3 %v552_v1  ;;  %v561_v52 = vld [vmem:[#allocation4 + $0x3c8] sm:$0xff] }
  0x6d   :  { %582 = vmatpush.msra.mxu0 %v454_v25  ;;  %602 = vmatpush.msra.mxu1 %v486_v26  ;;  %v540_v25 = vld [vmem:[#allocation4 + $0x320] sm:$0xff]  ;;  %v445_v26 = vld [vmem:[#allocation4 + $0x28] sm:$0xff] }
  0x6e   :  { %622 = vmatpush.msra.mxu2 %v518_v56  ;;  %642 = vmatpush.msra.mxu3 %v550_v6  ;;  %v559_v56 = vld [vmem:[#allocation4 + $0x3b8] sm:$0xff] }
  0x6f   :  { %583 = vmatpush.msra.mxu0 %v452_v27  ;;  %603 = vmatpush.msra.mxu1 %v484_v28  ;;  %v479_v27 = vld [vmem:[#allocation4 + $0x138] sm:$0xff]  ;;  %v533_v28 = vld [vmem:[#allocation4 + $0x2e8] sm:$0xff] }
  0x70   :  { %623 = vmatpush.msra.mxu2 %v516_v60  ;;  %643 = vmatpush.msra.mxu3 %v548_v11  ;;  %v557_v60 = vld [vmem:[#allocation4 + $0x3a8] sm:$0xff]  ;;  %v551_v6 = vld [vmem:[#allocation4 + $0x378] sm:$0xff] }
  0x71   :  { %584 = vmatpush.msra.mxu0 %v450_v29  ;;  %604 = vmatpush.msra.mxu1 %v482_v30  ;;  %v538_v29 = vld [vmem:[#allocation4 + $0x310] sm:$0xff]  ;;  %v443_v30 = vld [vmem:[#allocation4 + $0x18] sm:$0xff] }
  0x72   :  { %624 = vmatpush.msra.mxu2 %v514_v0  ;;  %644 = vmatpush.msra.mxu3 %v546_v14  ;;  %v555_v0 = vld [vmem:[#allocation4 + $0x398] sm:$0xff] }
  0x73   :  { %585 = vmatpush.msra.mxu0 %v448_v31  ;;  %605 = vmatpush.msra.mxu1 %v480_v32  ;;  %v477_v31 = vld [vmem:[#allocation4 + $0x128] sm:$0xff]  ;;  %v1549_v32 = vld [vmem:[%s1572_s2] sm:$0xf]  ;;  %v507_v14 = vld [vmem:[#allocation4 + $0x218] sm:$0xff] }
  0x74   :  { %625 = vmatpush.msra.mxu2 %v512_v5  ;;  %645 = vmatpush.msra.mxu3 %v544_v17  ;;  %v513_v5 = vld [vmem:[#allocation4 + $0x248] sm:$0xff] }
  0x75   :  { %586 = vmatpush.msra.mxu0 %v446_v33  ;;  %606 = vmatpush.msra.mxu1 %v478_v34  ;;  %v531_v33 = vld [vmem:[#allocation4 + $0x2d8] sm:$0xff]  ;;  %v536_v34 = vld [vmem:[#allocation4 + $0x300] sm:$0xff] }
  0x76   :  { %626 = vmatpush.msra.mxu2 %v510_v10  ;;  %646 = vmatpush.msra.mxu3 %v542_v21  ;;  %v539_v21 = vld [vmem:[#allocation4 + $0x318] sm:$0xff] }
  0x77   :  { %587 = vmatpush.msra.mxu0 %v444_v35  ;;  %607 = vmatpush.msra.mxu1 %v476_v36  ;;  %v441_v35 = vld [vmem:[#allocation4 + $0x8] sm:$0xff]  ;;  %v475_v36 = vld [vmem:[#allocation4 + $0x118] sm:$0xff] }
  0x78   :  { %627 = vmatpush.msra.mxu2 %v508_v2  ;;  %647 = vmatpush.msra.mxu3 %v540_v25 }
  0x79   :  { %588 = vmatpush.msra.mxu0 %v442_v37  ;;  %608 = vmatpush.msra.mxu1 %v474_v38  ;;  %v529_v37 = vld [vmem:[#allocation4 + $0x2c8] sm:$0xff]  ;;  %v567_v38 = vld [vmem:[#allocation4 + $0x3f8] sm:$0xff] }
  0x7a   :  { %628 = vmatpush.msra.mxu2 %v506_v16  ;;  %648 = vmatpush.msra.mxu3 %v538_v29 }
  0x7b   :  { %589 = vmatpush.msra.mxu0 %v440_v39  ;;  %609 = vmatpush.msra.mxu1 %v472_v40  ;;  %v248_v39 = vperm.slane %v1549_v32, 0  ;;  %v473_v40 = vld [vmem:[#allocation4 + $0x108] sm:$0xff] }
  0x7c   :  { %629 = vmatpush.msra.mxu2 %v504_v20  ;;  %649 = vmatpush.msra.mxu3 %v536_v34  ;;  %v541_v20 = vld [vmem:[#allocation4 + $0x328] sm:$0xff] }
  0x7d   :  { %654 = vmatpush.msrb.mxu0 %v471_v41  ;;  %674 = vmatpush.msrb.mxu1 %v503_v42  ;;  %v249_v41 = vperm.slane %v1549_v32, 1  ;;  %v527_v42 = vld [vmem:[#allocation4 + $0x2b8] sm:$0xff] }
  0x7e   :  { %694 = vmatpush.msrb.mxu2 %v535_v24  ;;  %714 = vmatpush.msrb.mxu3 %v567_v38 }
  0x7f   :  { %655 = vmatpush.msrb.mxu0 %v469_v43  ;;  %675 = vmatpush.msrb.mxu1 %v501_v47  ;;  %v565_v43 = vld [vmem:[#allocation4 + $0x3e8] sm:$0xff] }
  0x80   :  { %695 = vmatpush.msrb.mxu2 %v533_v28  ;;  %715 = vmatpush.msrb.mxu3 %v565_v43  ;;  %v251_v28 = vperm.slane %v1549_v32, 3 }
  0x81   :  { %656 = vmatpush.msrb.mxu0 %v467_v46  ;;  %676 = vmatpush.msrb.mxu1 %v499_v51  ;;  %v563_v46 = vld [vmem:[#allocation4 + $0x3d8] sm:$0xff] }
  0x82   :  { %696 = vmatpush.msrb.mxu2 %v531_v33  ;;  %716 = vmatpush.msrb.mxu3 %v563_v46  ;;  %v523_v51 = vld [vmem:[#allocation4 + $0x298] sm:$0xff]  ;;  %v803_v46 = vld [vmem:[#allocation6 + $0x1c8] sm:$0xff] }
  0x83   :  { %657 = vmatpush.msrb.mxu0 %v465_v50  ;;  %677 = vmatpush.msrb.mxu1 %v497_v55  ;;  %v521_v55 = vld [vmem:[#allocation4 + $0x288] sm:$0xff] }
  0x84   :  { %697 = vmatpush.msrb.mxu2 %v529_v37  ;;  %717 = vmatpush.msrb.mxu3 %v561_v52  ;;  %v870_v52 = vld [vmem:[#allocation6 + $0x3e0] sm:$0xff] }
  0x85   :  { %658 = vmatpush.msrb.mxu0 %v463_v54  ;;  %678 = vmatpush.msrb.mxu1 %v495_v59  ;;  %v519_v59 = vld [vmem:[#allocation4 + $0x278] sm:$0xff] }
  0x86   :  { %698 = vmatpush.msrb.mxu2 %v527_v42  ;;  %718 = vmatpush.msrb.mxu3 %v559_v56  ;;  %v866_v56 = vld [vmem:[#allocation6 + $0x3c0] sm:$0xff] }
  0x87   :  { %659 = vmatpush.msrb.mxu0 %v461_v58  ;;  %679 = vmatpush.msrb.mxu1 %v493_v63  ;;  %v517_v63 = vld [vmem:[#allocation4 + $0x268] sm:$0xff] }
  0x88   :  { %699 = vmatpush.msrb.mxu2 %v525_v45  ;;  %719 = vmatpush.msrb.mxu3 %v557_v60  ;;  %v802_v45 = vld [vmem:[#allocation6 + $0x1c0] sm:$0xff] }
  0x89   :  { %660 = vmatpush.msrb.mxu0 %v459_v62  ;;  %680 = vmatpush.msrb.mxu1 %v491_v4  ;;  %v553_v4 = vld [vmem:[#allocation4 + $0x388] sm:$0xff]  ;;  %v862_v60 = vld [vmem:[#allocation6 + $0x3a0] sm:$0xff] }
  0x8a   :  { %700 = vmatpush.msrb.mxu2 %v523_v51  ;;  %720 = vmatpush.msrb.mxu3 %v555_v0  ;;  %v790_v51 = vld [vmem:[#allocation6 + $0x160] sm:$0xff] }
  0x8b   :  { %661 = vmatpush.msrb.mxu0 %v457_v3  ;;  %681 = vmatpush.msrb.mxu1 %v489_v9  ;;  %v515_v3 = vld [vmem:[#allocation4 + $0x258] sm:$0xff]  ;;  %v549_v9 = vld [vmem:[#allocation4 + $0x368] sm:$0xff]  ;;  %v858_v0 = vld [vmem:[#allocation6 + $0x380] sm:$0xff] }
  0x8c   :  { %701 = vmatpush.msrb.mxu2 %v521_v55  ;;  %721 = vmatpush.msrb.mxu3 %v553_v4  ;;  %v786_v55 = vld [vmem:[#allocation6 + $0x140] sm:$0xff] }
  0x8d   :  { %662 = vmatpush.msrb.mxu0 %v455_v7  ;;  %682 = vmatpush.msrb.mxu1 %v487_v13  ;;  %v511_v7 = vld [vmem:[#allocation4 + $0x238] sm:$0xff]  ;;  %v774_v4 = vld [vmem:[#allocation6 + $0xe0] sm:$0xff] }
  0x8e   :  { %702 = vmatpush.msrb.mxu2 %v519_v59  ;;  %722 = vmatpush.msrb.mxu3 %v551_v6  ;;  %v547_v13 = vld [vmem:[#allocation4 + $0x358] sm:$0xff]  ;;  %v782_v59 = vld [vmem:[#allocation6 + $0x120] sm:$0xff]  ;;  %v775_v6 = vld [vmem:[#allocation6 + $0xe8] sm:$0xff] }
  0x8f   :  { %663 = vmatpush.msrb.mxu0 %v453_v12  ;;  %683 = vmatpush.msrb.mxu1 %v485_v8  ;;  %v509_v12 = vld [vmem:[#allocation4 + $0x228] sm:$0xff] }
  0x90   :  { %703 = vmatpush.msrb.mxu2 %v517_v63  ;;  %723 = vmatpush.msrb.mxu3 %v549_v9  ;;  %v778_v63 = vld [vmem:[#allocation6 + $0x100] sm:$0xff] }
  0x91   :  { %664 = vmatpush.msrb.mxu0 %v451_v15  ;;  %684 = vmatpush.msrb.mxu1 %v483_v19  ;;  %v545_v15 = vld [vmem:[#allocation4 + $0x348] sm:$0xff]  ;;  %v543_v19 = vld [vmem:[#allocation4 + $0x338] sm:$0xff]  ;;  %v770_v9 = vld [vmem:[#allocation6 + $0xc0] sm:$0xff] }
  0x92   :  { %704 = vmatpush.msrb.mxu2 %v515_v3  ;;  %724 = vmatpush.msrb.mxu3 %v547_v13  ;;  %v859_v3 = vld [vmem:[#allocation6 + $0x388] sm:$0xff]  ;;  %v766_v13 = vld [vmem:[#allocation6 + $0xa0] sm:$0xff] }
  0x93   :  { %665 = vmatpush.msrb.mxu0 %v449_v18  ;;  %685 = vmatpush.msrb.mxu1 %v481_v23  ;;  %v505_v18 = vld [vmem:[#allocation4 + $0x208] sm:$0xff] }
  0x94   :  { %705 = vmatpush.msrb.mxu2 %v513_v5  ;;  %725 = vmatpush.msrb.mxu3 %v545_v15  ;;  %v537_v23 = vld [vmem:[#allocation4 + $0x308] sm:$0xff]  ;;  %v854_v5 = vld [vmem:[#allocation6 + $0x360] sm:$0xff] }
  0x95   :  { %666 = vmatpush.msrb.mxu0 %v447_v22  ;;  %686 = vmatpush.msrb.mxu1 %v479_v27  ;;  %v250_v22 = vperm.slane %v1549_v32, 2  ;;  %v806_v32 = vld [vmem:[#allocation6 + $0x1e0] sm:$0xff]  ;;  %v847_v15 = vld [vmem:[#allocation6 + $0x328] sm:$0xff] }
  0x96   :  { %706 = vmatpush.msrb.mxu2 %v511_v7  ;;  %726 = vmatpush.msrb.mxu3 %v543_v19  ;;  %v855_v7 = vld [vmem:[#allocation6 + $0x368] sm:$0xff]  ;;  %v758_v19 = vld [vmem:[#allocation6 + $0x60] sm:$0xff] }
  0x97   :  { %667 = vmatpush.msrb.mxu0 %v445_v26  ;;  %687 = vmatpush.msrb.mxu1 %v477_v31 }
  0x98   :  { %707 = vmatpush.msrb.mxu2 %v509_v12  ;;  %727 = vmatpush.msrb.mxu3 %v541_v20  ;;  %v851_v12 = vld [vmem:[#allocation6 + $0x348] sm:$0xff]  ;;  %v838_v20 = vld [vmem:[#allocation6 + $0x2e0] sm:$0xff] }
  0x99   :  { %668 = vmatpush.msrb.mxu0 %v443_v30  ;;  %688 = vmatpush.msrb.mxu1 %v475_v36 }
  0x9a   :  { %708 = vmatpush.msrb.mxu2 %v507_v14  ;;  %728 = vmatpush.msrb.mxu3 %v539_v21  ;;  %v767_v14 = vld [vmem:[#allocation6 + $0xa8] sm:$0xff] }
  0x9b   :  { %669 = vmatpush.msrb.mxu0 %v441_v35  ;;  %689 = vmatpush.msrb.mxu1 %v473_v40  ;;  %v759_v21 = vld [vmem:[#allocation6 + $0x68] sm:$0xff] }
  0x9c   :  { %709 = vmatpush.msrb.mxu2 %v505_v18  ;;  %729 = vmatpush.msrb.mxu3 %v537_v23  ;;  %v843_v18 = vld [vmem:[#allocation6 + $0x308] sm:$0xff]  ;;  %v754_v23 = vld [vmem:[#allocation6 + $0x40] sm:$0xff] }
  0xbc   :  { %v273_v44 = vpop.f32.mrf.mxu0 }
  0xbd   :  { %v274_v47 = vadd.f32 %v273_v44, %v248_v39  ;;  %v313_v48 = vpop.f32.mrf.mxu2  ;;  %v807_v44 = vld [vmem:[#allocation6 + $0x1e8] sm:$0xff] }
  0xbe   :  { %v293_v49 = vpop.f32.mrf.mxu1  ;;  %v314_v50 = vadd.f32 %v313_v48, %v249_v41  ;;  %v799_v48 = vld [vmem:[#allocation6 + $0x1a8] sm:$0xff] }
  0xbf   :  { %v294_v53 = vadd.f32 %v293_v49, %v274_v47  ;;  %v798_v47 = vld [vmem:[#allocation6 + $0x1a0] sm:$0xff] }
  0xc0   :  { %v333_v54 = vpop.f32.mrf.mxu3  ;;  %v794_v49 = vld [vmem:[#allocation6 + $0x180] sm:$0xff] }
  0xc1   :  { %v420_v57 = vmin.f32 %v294_v53, 0.0  ;;  %v334_v58 = vadd.f32 %v333_v54, %v314_v50  ;;  %vm416_vm0 = vcmp.gt.f32.partialorder %v294_v53, 0.0  ;;  %v795_v50 = vld [vmem:[#allocation6 + $0x188] sm:$0xff] }
  0xc2   :  { %v871_v54 = vld [vmem:[#allocation6 + $0x3e8] sm:$0xff] }
  0xc3   :  { %v424_v61 = vmul.f32 1.442695, %v420_v57  ;;  %v421_v62 = vmin.f32 %v334_v58, 0.0  ;;  %vm417_vm1 = vcmp.gt.f32.partialorder %v334_v58, 0.0  ;;  %v787_v57 = vld [vmem:[#allocation6 + $0x148] sm:$0xff] }
  0xc5   :  { %1294 = vpow2.f32 %v424_v61  ;;  %v426_v1 = vmul.f32 1.442695, %v421_v62  ;;  %v783_v61 = vld [vmem:[#allocation6 + $0x128] sm:$0xff] }
  0xc6   :  { %v863_v62 = vld [vmem:[#allocation6 + $0x3a8] sm:$0xff] }
  0xc7   :  { %1296 = vpow2.f32 %v426_v1  ;;  %v779_v1 = vld [vmem:[#allocation6 + $0x108] sm:$0xff] }
  0xcb   :  { %v1295_v10 = vpop.eup %1294 }
  0xcc   :  { %v1270_v11 = vadd.f32 -1.0, %v1295_v10  ;;  %v850_v10 = vld [vmem:[#allocation6 + $0x340] sm:$0xff] }
  0xcd   :  { %v1297_v2 = vpop.eup %1296 }
  0xce   :  { %v1271_v8 = vadd.f32 -1.0, %v1297_v2  ;;  %v436_v16 = vsel %vm416_vm0, %v294_v53, %v1270_v11  ;;  %v791_v53 = vld [vmem:[#allocation6 + $0x168] sm:$0xff]  ;;  %v846_v2 = vld [vmem:[#allocation6 + $0x320] sm:$0xff] }
  0xcf   :  { %590 = vmatmul.f32.vlgmr.msra.gmra.mxu0 %v436_v16  ;;  %v771_v11 = vld [vmem:[#allocation6 + $0xc8] sm:$0xff] }
  0xd0   :  { %v437_v17 = vsel %vm417_vm1, %v334_v58, %v1271_v8  ;;  %884 = vmatpush.msra.mxu0 %v806_v32  ;;  %v867_v58 = vld [vmem:[#allocation6 + $0x3c8] sm:$0xff]  ;;  %v762_v8 = vld [vmem:[#allocation6 + $0x80] sm:$0xff]  ;;  %v800_v32 = vld [vmem:[#allocation6 + $0x1b0] sm:$0xff] }
  0xd1   :  { %610 = vmatmul.f32.vlgmr.msra.gmra.mxu1 %v437_v17 }
  0xd2   :  { %885 = vmatpush.msra.mxu0 %v802_v45  ;;  %904 = vmatpush.msra.mxu1 %v870_v52  ;;  %v814_v45 = vld [vmem:[#allocation6 + $0x220] sm:$0xff]  ;;  %v872_v52 = vld [vmem:[#allocation6 + $0x3f0] sm:$0xff] }
  0xd4   :  { %886 = vmatpush.msra.mxu0 %v798_v47  ;;  %905 = vmatpush.msra.mxu1 %v866_v56  ;;  %v796_v47 = vld [vmem:[#allocation6 + $0x190] sm:$0xff] }
  0xd5   :  { %v868_v56 = vld [vmem:[#allocation6 + $0x3d0] sm:$0xff] }
  0xd6   :  { %887 = vmatpush.msra.mxu0 %v794_v49  ;;  %906 = vmatpush.msra.mxu1 %v862_v60  ;;  %v810_v49 = vld [vmem:[#allocation6 + $0x200] sm:$0xff]  ;;  %v864_v60 = vld [vmem:[#allocation6 + $0x3b0] sm:$0xff] }
  0xd7   :  { %v353_v24 = vpop.f32.mrf.mxu0  ;;  %670 = vmatmul.f32.vlgmr.msrb.gmra.mxu0 %v436_v16  ;;  %v842_v16 = vld [vmem:[#allocation6 + $0x300] sm:$0xff] }
  0xd8   :  { %v354_v25 = vadd.f32 %v353_v24, %v250_v22  ;;  %888 = vmatpush.msra.mxu0 %v790_v51  ;;  %907 = vmatpush.msra.mxu1 %v858_v0  ;;  %v839_v22 = vld [vmem:[#allocation6 + $0x2e8] sm:$0xff]  ;;  %v834_v24 = vld [vmem:[#allocation6 + $0x2c0] sm:$0xff]  ;;  %v792_v51 = vld [vmem:[#allocation6 + $0x170] sm:$0xff] }
  0xd9   :  { %v373_v26 = vpop.f32.mrf.mxu1  ;;  %690 = vmatmul.f32.vlgmr.msrb.gmra.mxu1 %v437_v17  ;;  %v763_v17 = vld [vmem:[#allocation6 + $0x88] sm:$0xff]  ;;  %v860_v0 = vld [vmem:[#allocation6 + $0x390] sm:$0xff] }
  0xda   :  { %v374_v27 = vadd.f32 %v373_v26, %v354_v25  ;;  %889 = vmatpush.msra.mxu0 %v786_v55  ;;  %908 = vmatpush.msra.mxu1 %v854_v5  ;;  %v755_v25 = vld [vmem:[#allocation6 + $0x48] sm:$0xff]  ;;  %v788_v55 = vld [vmem:[#allocation6 + $0x150] sm:$0xff] }
  0xdb   :  { %v835_v26 = vld [vmem:[#allocation6 + $0x2c8] sm:$0xff]  ;;  %v856_v5 = vld [vmem:[#allocation6 + $0x370] sm:$0xff] }
  0xdc   :  { %v422_v29 = vmin.f32 %v374_v27, 0.0  ;;  %vm418_vm2 = vcmp.gt.f32.partialorder %v374_v27, 0.0  ;;  %890 = vmatpush.msra.mxu0 %v782_v59  ;;  %909 = vmatpush.msra.mxu1 %v850_v10  ;;  %v784_v59 = vld [vmem:[#allocation6 + $0x130] sm:$0xff] }
  0xdd   :  { %v393_v30 = vpop.f32.mrf.mxu2  ;;  %v852_v10 = vld [vmem:[#allocation6 + $0x350] sm:$0xff] }
  0xde   :  { %v428_v31 = vmul.f32 1.442695, %v422_v29  ;;  %v394_v33 = vadd.f32 %v393_v30, %v251_v28  ;;  %891 = vmatpush.msra.mxu0 %v778_v63  ;;  %910 = vmatpush.msra.mxu1 %v846_v2  ;;  %v830_v28 = vld [vmem:[#allocation6 + $0x2a0] sm:$0xff]  ;;  %v751_v29 = vld [vmem:[#allocation6 + $0x28] sm:$0xff]  ;;  %v780_v63 = vld [vmem:[#allocation6 + $0x110] sm:$0xff] }
  0xdf   :  { %v413_v34 = vpop.f32.mrf.mxu3  ;;  %v831_v30 = vld [vmem:[#allocation6 + $0x2a8] sm:$0xff]  ;;  %v848_v2 = vld [vmem:[#allocation6 + $0x330] sm:$0xff] }
  0xe0   :  { %1298 = vpow2.f32 %v428_v31  ;;  %v414_v35 = vadd.f32 %v413_v34, %v394_v33  ;;  %892 = vmatpush.msra.mxu0 %v774_v4  ;;  %911 = vmatpush.msra.mxu1 %v842_v16  ;;  %v746_v31 = vld [vmem:[#allocation6] sm:$0xff]  ;;  %v747_v34 = vld [vmem:[#allocation6 + $0x8] sm:$0xff]  ;;  %v776_v4 = vld [vmem:[#allocation6 + $0xf0] sm:$0xff] }
  0xe1   :  { %v826_v33 = vld [vmem:[#allocation6 + $0x280] sm:$0xff]  ;;  %v844_v16 = vld [vmem:[#allocation6 + $0x310] sm:$0xff] }
  0xe2   :  { %v423_v36 = vmin.f32 %v414_v35, 0.0  ;;  %vm419_vm3 = vcmp.gt.f32.partialorder %v414_v35, 0.0  ;;  %893 = vmatpush.msra.mxu0 %v770_v9  ;;  %912 = vmatpush.msra.mxu1 %v838_v20  ;;  %v772_v9 = vld [vmem:[#allocation6 + $0xd0] sm:$0xff] }
  0xe3   :  { %v840_v20 = vld [vmem:[#allocation6 + $0x2f0] sm:$0xff] }
  0xe4   :  { %v430_v37 = vmul.f32 1.442695, %v423_v36  ;;  %894 = vmatpush.msra.mxu0 %v766_v13  ;;  %913 = vmatpush.msra.mxu1 %v834_v24  ;;  %v808_v36 = vld [vmem:[#allocation6 + $0x1f0] sm:$0xff] }
  0xe5   :  { %v768_v13 = vld [vmem:[#allocation6 + $0xb0] sm:$0xff] }
  0xe6   :  { %v1299_v38 = vpop.eup %1298  ;;  %1300 = vpow2.f32 %v430_v37  ;;  %895 = vmatpush.msra.mxu0 %v762_v8  ;;  %914 = vmatpush.msra.mxu1 %v830_v28  ;;  %v809_v37 = vld [vmem:[#allocation6 + $0x1f8] sm:$0xff]  ;;  %v764_v8 = vld [vmem:[#allocation6 + $0x90] sm:$0xff] }
  0xe7   :  { %v1272_v39 = vadd.f32 -1.0, %v1299_v38  ;;  %v822_v38 = vld [vmem:[#allocation6 + $0x260] sm:$0xff]  ;;  %v756_v24 = vld [vmem:[#allocation6 + $0x50] sm:$0xff]  ;;  %v837_v28 = vld [vmem:[#allocation6 + $0x2d8] sm:$0xff] }
  0xe8   :  { %896 = vmatpush.msra.mxu0 %v758_v19  ;;  %915 = vmatpush.msra.mxu1 %v826_v33  ;;  %v760_v19 = vld [vmem:[#allocation6 + $0x70] sm:$0xff]  ;;  %v753_v33 = vld [vmem:[#allocation6 + $0x38] sm:$0xff] }
  0xe9   :  { %v438_v40 = vsel %vm418_vm2, %v374_v27, %v1272_v39  ;;  %v750_v27 = vld [vmem:[#allocation6 + $0x20] sm:$0xff]  ;;  %v823_v39 = vld [vmem:[#allocation6 + $0x268] sm:$0xff] }
  0xea   :  { %630 = vmatmul.f32.vlgmr.msra.gmra.mxu2 %v438_v40  ;;  %897 = vmatpush.msra.mxu0 %v754_v23  ;;  %v841_v23 = vld [vmem:[#allocation6 + $0x2f8] sm:$0xff] }
  0xeb   :  { %924 = vmatpush.msra.mxu2 %v807_v44  ;;  %916 = vmatpush.msra.mxu1 %v822_v38  ;;  %v801_v44 = vld [vmem:[#allocation6 + $0x1b8] sm:$0xff] }
  0xec   :  { %v1301_v41 = vpop.eup %1300  ;;  %898 = vmatpush.msra.mxu0 %v750_v27  ;;  %v829_v38 = vld [vmem:[#allocation6 + $0x298] sm:$0xff] }
  0xed   :  { %v1273_v42 = vadd.f32 -1.0, %v1301_v41  ;;  %925 = vmatpush.msra.mxu2 %v803_v46  ;;  %v805_v41 = vld [vmem:[#allocation6 + $0x1d8] sm:$0xff]  ;;  %v815_v46 = vld [vmem:[#allocation6 + $0x228] sm:$0xff] }
  0xee   :  { %899 = vmatpush.msra.mxu0 %v746_v31  ;;  %v832_v31 = vld [vmem:[#allocation6 + $0x2b0] sm:$0xff] }
  0xef   :  { %v439_v43 = vsel %vm419_vm3, %v414_v35, %v1273_v42  ;;  %926 = vmatpush.msra.mxu2 %v799_v48  ;;  %v827_v35 = vld [vmem:[#allocation6 + $0x288] sm:$0xff]  ;;  %v818_v42 = vld [vmem:[#allocation6 + $0x240] sm:$0xff]  ;;  %v797_v48 = vld [vmem:[#allocation6 + $0x198] sm:$0xff] }
  0xf0   :  { %650 = vmatmul.f32.vlgmr.msra.gmra.mxu3 %v439_v43  ;;  %964 = vmatpush.msrb.mxu0 %v808_v36  ;;  %v828_v36 = vld [vmem:[#allocation6 + $0x290] sm:$0xff] }
  0xf1   :  { %927 = vmatpush.msra.mxu2 %v795_v50  ;;  %944 = vmatpush.msra.mxu3 %v871_v54  ;;  %v811_v50 = vld [vmem:[#allocation6 + $0x208] sm:$0xff]  ;;  %v873_v54 = vld [vmem:[#allocation6 + $0x3f8] sm:$0xff] }
  0xf2   :  { %710 = vmatmul.f32.vlgmr.msrb.gmra.mxu2 %v438_v40  ;;  %v804_v40 = vld [vmem:[#allocation6 + $0x1d0] sm:$0xff]  ;;  %917 = vmatpush.msra.mxu1 %v818_v42 }
  0xf3   :  { %928 = vmatpush.msra.mxu2 %v791_v53  ;;  %945 = vmatpush.msra.mxu3 %v867_v58  ;;  %v793_v53 = vld [vmem:[#allocation6 + $0x178] sm:$0xff]  ;;  %v824_v42 = vld [vmem:[#allocation6 + $0x270] sm:$0xff] }
  0xf4   :  { %965 = vmatpush.msrb.mxu0 %v804_v40  ;;  %918 = vmatpush.msra.mxu1 %v814_v45  ;;  %v869_v58 = vld [vmem:[#allocation6 + $0x3d8] sm:$0xff]  ;;  %v816_v45 = vld [vmem:[#allocation6 + $0x230] sm:$0xff] }
  0xf5   :  { %929 = vmatpush.msra.mxu2 %v787_v57  ;;  %946 = vmatpush.msra.mxu3 %v863_v62  ;;  %v789_v57 = vld [vmem:[#allocation6 + $0x158] sm:$0xff] }
  0xf6   :  { %966 = vmatpush.msrb.mxu0 %v800_v32  ;;  %919 = vmatpush.msra.mxu1 %v810_v49  ;;  %v865_v62 = vld [vmem:[#allocation6 + $0x3b8] sm:$0xff]  ;;  %v820_v32 = vld [vmem:[#allocation6 + $0x250] sm:$0xff] }
  0xf7   :  { %930 = vmatpush.msra.mxu2 %v783_v61  ;;  %947 = vmatpush.msra.mxu3 %v859_v3  ;;  %v785_v61 = vld [vmem:[#allocation6 + $0x138] sm:$0xff] }
  0xf8   :  { %730 = vmatmul.f32.vlgmr.msrb.gmra.mxu3 %v439_v43  ;;  %v819_v43 = vld [vmem:[#allocation6 + $0x248] sm:$0xff]  ;;  %967 = vmatpush.msrb.mxu0 %v796_v47  ;;  %v861_v3 = vld [vmem:[#allocation6 + $0x398] sm:$0xff] }
  0xf9   :  { %931 = vmatpush.msra.mxu2 %v779_v1  ;;  %948 = vmatpush.msra.mxu3 %v855_v7  ;;  %v781_v1 = vld [vmem:[#allocation6 + $0x118] sm:$0xff] }
  0xfa   :  { %968 = vmatpush.msrb.mxu0 %v792_v51  ;;  %984 = vmatpush.msrb.mxu1 %v872_v52  ;;  %v857_v7 = vld [vmem:[#allocation6 + $0x378] sm:$0xff] }
  0xfb   :  { %932 = vmatpush.msra.mxu2 %v775_v6  ;;  %949 = vmatpush.msra.mxu3 %v851_v12  ;;  %v777_v6 = vld [vmem:[#allocation6 + $0xf8] sm:$0xff] }
  0xfc   :  { %969 = vmatpush.msrb.mxu0 %v788_v55  ;;  %985 = vmatpush.msrb.mxu1 %v868_v56  ;;  %v853_v12 = vld [vmem:[#allocation6 + $0x358] sm:$0xff] }
  0xfd   :  { %933 = vmatpush.msra.mxu2 %v771_v11  ;;  %950 = vmatpush.msra.mxu3 %v847_v15  ;;  %v773_v11 = vld [vmem:[#allocation6 + $0xd8] sm:$0xff] }
  0xfe   :  { %970 = vmatpush.msrb.mxu0 %v784_v59  ;;  %986 = vmatpush.msrb.mxu1 %v864_v60  ;;  %v849_v15 = vld [vmem:[#allocation6 + $0x338] sm:$0xff] }
  0xff   :  { %934 = vmatpush.msra.mxu2 %v767_v14  ;;  %951 = vmatpush.msra.mxu3 %v843_v18  ;;  %v769_v14 = vld [vmem:[#allocation6 + $0xb8] sm:$0xff] }
 0x100   :  { %971 = vmatpush.msrb.mxu0 %v780_v63  ;;  %987 = vmatpush.msrb.mxu1 %v860_v0  ;;  %v845_v18 = vld [vmem:[#allocation6 + $0x318] sm:$0xff] }
 0x101   :  { %935 = vmatpush.msra.mxu2 %v763_v17  ;;  %952 = vmatpush.msra.mxu3 %v839_v22  ;;  %v765_v17 = vld [vmem:[#allocation6 + $0x98] sm:$0xff]  ;;  %v568_v22 = vld [vmem:[%s1574_s4] sm:$0x3] }
 0x102   :  { %972 = vmatpush.msrb.mxu0 %v776_v4  ;;  %988 = vmatpush.msrb.mxu1 %v856_v5  ;;  %v571_v47 = vperm.slane %v568_v22, 1  ;;  %v813_v52 = vld [vmem:[#allocation6 + $0x218] sm:$0xff] }
 0x103   :  { %936 = vmatpush.msra.mxu2 %v759_v21  ;;  %953 = vmatpush.msra.mxu3 %v835_v26  ;;  %v761_v21 = vld [vmem:[#allocation6 + $0x78] sm:$0xff] }
 0x104   :  { %973 = vmatpush.msrb.mxu0 %v772_v9  ;;  %989 = vmatpush.msrb.mxu1 %v852_v10  ;;  %v757_v26 = vld [vmem:[#allocation6 + $0x58] sm:$0xff]  ;;  %v1081_v9 = vld [vmem:[#allocation7 + $0x68] sm:$0xff] }
 0x105   :  { %937 = vmatpush.msra.mxu2 %v755_v25  ;;  %954 = vmatpush.msra.mxu3 %v831_v30  ;;  %v836_v25 = vld [vmem:[#allocation6 + $0x2d0] sm:$0xff]  ;;  %v1083_v5 = vld [vmem:[#allocation7 + $0x78] sm:$0xff] }
 0x106   :  { %974 = vmatpush.msrb.mxu0 %v768_v13  ;;  %990 = vmatpush.msrb.mxu1 %v848_v2  ;;  %v752_v30 = vld [vmem:[#allocation6 + $0x30] sm:$0xff]  ;;  %v1080_v13 = vld [vmem:[#allocation7 + $0x60] sm:$0xff]  ;;  %v1099_v2 = vld [vmem:[#allocation7 + $0xf8] sm:$0xff] }
 0x107   :  { %938 = vmatpush.msra.mxu2 %v751_v29  ;;  %955 = vmatpush.msra.mxu3 %v827_v35  ;;  %v570_v29 = vperm.slane %v568_v22, 0  ;;  %v748_v35 = vld [vmem:[#allocation6 + $0x10] sm:$0xff]  ;;  %v1076_v22 = vld [vmem:[#allocation7 + $0x40] sm:$0xff] }
 0x108   :  { %975 = vmatpush.msrb.mxu0 %v764_v8  ;;  %991 = vmatpush.msrb.mxu1 %v844_v16  ;;  %v1115_v8 = vld [vmem:[#allocation7 + $0x178] sm:$0xff]  ;;  %v1078_v16 = vld [vmem:[#allocation7 + $0x50] sm:$0xff] }
 0x109   :  { %939 = vmatpush.msra.mxu2 %v747_v34  ;;  %956 = vmatpush.msra.mxu3 %v823_v39  ;;  %v833_v34 = vld [vmem:[#allocation6 + $0x2b8] sm:$0xff] }
 0x10a   :  { %976 = vmatpush.msrb.mxu0 %v760_v19  ;;  %992 = vmatpush.msrb.mxu1 %v840_v20  ;;  %v1077_v19 = vld [vmem:[#allocation7 + $0x48] sm:$0xff]  ;;  %v1096_v20 = vld [vmem:[#allocation7 + $0xe0] sm:$0xff] }
 0x10b   :  { %1004 = vmatpush.msrb.mxu2 %v809_v37  ;;  %957 = vmatpush.msra.mxu3 %v819_v43  ;;  %v749_v37 = vld [vmem:[#allocation6 + $0x18] sm:$0xff] }
 0x10c   :  { %977 = vmatpush.msrb.mxu0 %v756_v24  ;;  %993 = vmatpush.msrb.mxu1 %v836_v25  ;;  %v825_v43 = vld [vmem:[#allocation6 + $0x278] sm:$0xff]  ;;  %v1112_v24 = vld [vmem:[#allocation7 + $0x160] sm:$0xff] }
 0x10d   :  { %1005 = vmatpush.msrb.mxu2 %v805_v41  ;;  %958 = vmatpush.msra.mxu3 %v815_v46  ;;  %v1131_v25 = vld [vmem:[#allocation7 + $0x1f8] sm:$0xff] }
 0x10e   :  { %978 = vmatpush.msrb.mxu0 %v752_v30  ;;  %994 = vmatpush.msrb.mxu1 %v832_v31  ;;  %v1074_v30 = vld [vmem:[#allocation7 + $0x30] sm:$0xff]  ;;  %v1093_v31 = vld [vmem:[#allocation7 + $0xc8] sm:$0xff] }
 0x10f   :  { %1006 = vmatpush.msrb.mxu2 %v801_v44  ;;  %959 = vmatpush.msra.mxu3 %v811_v50  ;;  %v821_v44 = vld [vmem:[#allocation6 + $0x258] sm:$0xff]  ;;  %v812_v50 = vld [vmem:[#allocation6 + $0x210] sm:$0xff] }
 0x110   :  { %979 = vmatpush.msrb.mxu0 %v748_v35  ;;  %995 = vmatpush.msrb.mxu1 %v828_v36  ;;  %v1073_v35 = vld [vmem:[#allocation7 + $0x28] sm:$0xff]  ;;  %v1092_v36 = vld [vmem:[#allocation7 + $0xc0] sm:$0xff] }
 0x111   :  { %1007 = vmatpush.msrb.mxu2 %v797_v48  ;;  %1024 = vmatpush.msrb.mxu3 %v873_v54  ;;  %v817_v48 = vld [vmem:[#allocation6 + $0x238] sm:$0xff] }
 0x112   :  { %996 = vmatpush.msrb.mxu1 %v824_v42  ;;  %v1127_v42 = vld [vmem:[#allocation7 + $0x1d8] sm:$0xff] }
 0x113   :  { %1008 = vmatpush.msrb.mxu2 %v793_v53  ;;  %1025 = vmatpush.msrb.mxu3 %v869_v58 }
 0x114   :  { %997 = vmatpush.msrb.mxu1 %v820_v32  ;;  %v1090_v32 = vld [vmem:[#allocation7 + $0xb0] sm:$0xff] }
 0x115   :  { %1009 = vmatpush.msrb.mxu2 %v789_v57  ;;  %1026 = vmatpush.msrb.mxu3 %v865_v62 }
 0x116   :  { %998 = vmatpush.msrb.mxu1 %v816_v45  ;;  %v1126_v45 = vld [vmem:[#allocation7 + $0x1d0] sm:$0xff] }
 0x117   :  { %1010 = vmatpush.msrb.mxu2 %v785_v61  ;;  %1027 = vmatpush.msrb.mxu3 %v861_v3 }
 0x118   :  { %999 = vmatpush.msrb.mxu1 %v812_v50  ;;  %v1069_v50 = vld [vmem:[#allocation7 + $0x8] sm:$0xff] }
 0x119   :  { %1011 = vmatpush.msrb.mxu2 %v781_v1  ;;  %1028 = vmatpush.msrb.mxu3 %v857_v7  ;;  %v1082_v7 = vld [vmem:[#allocation7 + $0x70] sm:$0xff] }
 0x11b   :  { %1012 = vmatpush.msrb.mxu2 %v777_v6  ;;  %1029 = vmatpush.msrb.mxu3 %v853_v12 }
 0x11d   :  { %1013 = vmatpush.msrb.mxu2 %v773_v11  ;;  %1030 = vmatpush.msrb.mxu3 %v849_v15  ;;  %v1098_v15 = vld [vmem:[#allocation7 + $0xf0] sm:$0xff] }
 0x11f   :  { %1014 = vmatpush.msrb.mxu2 %v769_v14  ;;  %1031 = vmatpush.msrb.mxu3 %v845_v18  ;;  %v1079_v14 = vld [vmem:[#allocation7 + $0x58] sm:$0xff]  ;;  %v1114_v18 = vld [vmem:[#allocation7 + $0x170] sm:$0xff] }
 0x121   :  { %1015 = vmatpush.msrb.mxu2 %v765_v17  ;;  %1032 = vmatpush.msrb.mxu3 %v841_v23  ;;  %v1097_v17 = vld [vmem:[#allocation7 + $0xe8] sm:$0xff]  ;;  %v1095_v23 = vld [vmem:[#allocation7 + $0xd8] sm:$0xff] }
 0x123   :  { %1016 = vmatpush.msrb.mxu2 %v761_v21  ;;  %1033 = vmatpush.msrb.mxu3 %v837_v28  ;;  %v1113_v21 = vld [vmem:[#allocation7 + $0x168] sm:$0xff]  ;;  %v1111_v28 = vld [vmem:[#allocation7 + $0x158] sm:$0xff] }
 0x125   :  { %1017 = vmatpush.msrb.mxu2 %v757_v26  ;;  %1034 = vmatpush.msrb.mxu3 %v833_v34  ;;  %v1075_v26 = vld [vmem:[#allocation7 + $0x38] sm:$0xff]  ;;  %v1129_v34 = vld [vmem:[#allocation7 + $0x1e8] sm:$0xff] }
 0x127   :  { %1018 = vmatpush.msrb.mxu2 %v753_v33  ;;  %1035 = vmatpush.msrb.mxu3 %v829_v38  ;;  %v1110_v33 = vld [vmem:[#allocation7 + $0x150] sm:$0xff]  ;;  %v1128_v38 = vld [vmem:[#allocation7 + $0x1e0] sm:$0xff] }
 0x129   :  { %1019 = vmatpush.msrb.mxu2 %v749_v37  ;;  %1036 = vmatpush.msrb.mxu3 %v825_v43  ;;  %v1109_v37 = vld [vmem:[#allocation7 + $0x148] sm:$0xff]  ;;  %v1071_v43 = vld [vmem:[#allocation7 + $0x18] sm:$0xff] }
 0x12b   :  { %1037 = vmatpush.msrb.mxu3 %v821_v44  ;;  %v1107_v44 = vld [vmem:[#allocation7 + $0x138] sm:$0xff] }
 0x12d   :  { %1038 = vmatpush.msrb.mxu3 %v817_v48  ;;  %v1106_v48 = vld [vmem:[#allocation7 + $0x130] sm:$0xff] }
 0x12f   :  { %1039 = vmatpush.msrb.mxu3 %v813_v52  ;;  %v1105_v52 = vld [vmem:[#allocation7 + $0x128] sm:$0xff] }
 0x14c   :  { %v591_v27 = vpop.f32.mrf.mxu0 }
 0x14d   :  { %v592_v40 = vadd.f32 %v591_v27, %v570_v29  ;;  %v1094_v27 = vld [vmem:[#allocation7 + $0xd0] sm:$0xff] }
 0x14e   :  { %v611_v39 = vpop.f32.mrf.mxu1  ;;  %v1130_v29 = vld [vmem:[#allocation7 + $0x1f0] sm:$0xff] }
 0x14f   :  { %v612_v46 = vadd.f32 %v611_v39, %v592_v40  ;;  %v1072_v39 = vld [vmem:[#allocation7 + $0x20] sm:$0xff]  ;;  %v1091_v40 = vld [vmem:[#allocation7 + $0xb8] sm:$0xff] }
 0x154   :  { %v671_v49 = vpop.f32.mrf.mxu0 }
 0x155   :  { %v672_v54 = vadd.f32 %v671_v49, %v571_v47  ;;  %v1089_v47 = vld [vmem:[#allocation7 + $0xa8] sm:$0xff] }
 0x156   :  { %v691_v56 = vpop.f32.mrf.mxu1  ;;  %v1125_v49 = vld [vmem:[#allocation7 + $0x1c8] sm:$0xff] }
 0x157   :  { %v692_v59 = vadd.f32 %v691_v56, %v672_v54  ;;  %v1068_v54 = vld [vmem:[#allocation7] sm:$0xff] }
 0x158   :  { %v1104_v56 = vld [vmem:[#allocation7 + $0x120] sm:$0xff] }
 0x16d   :  { %v631_v41 = vpop.f32.mrf.mxu2 }
 0x16e   :  { %v632_v51 = vadd.f32 %v631_v41, %v612_v46  ;;  %v1108_v41 = vld [vmem:[#allocation7 + $0x140] sm:$0xff]  ;;  %v1070_v46 = vld [vmem:[#allocation7 + $0x10] sm:$0xff] }
 0x173   :  { %v651_v53 = vpop.f32.mrf.mxu3 }
 0x174   :  { %v652_v55 = vadd.f32 %v651_v53, %v632_v51  ;;  %v1088_v51 = vld [vmem:[#allocation7 + $0xa0] sm:$0xff] }
 0x175   :  { %v711_v58 = vpop.f32.mrf.mxu2  ;;  %v1124_v53 = vld [vmem:[#allocation7 + $0x1c0] sm:$0xff] }
 0x176   :  { %v736_v57 = vmin.f32 %v652_v55, 0.0  ;;  %v712_v61 = vadd.f32 %v711_v58, %v692_v59  ;;  %vm734_vm4 = vcmp.gt.f32.partialorder %v652_v55, 0.0  ;;  %v1086_v58 = vld [vmem:[#allocation7 + $0x90] sm:$0xff]  ;;  %v1103_v59 = vld [vmem:[#allocation7 + $0x118] sm:$0xff] }
 0x178   :  { %v738_v60 = vmul.f32 1.442695, %v736_v57  ;;  %v1123_v57 = vld [vmem:[#allocation7 + $0x1b8] sm:$0xff] }
 0x17a   :  { %1302 = vpow2.f32 %v738_v60  ;;  %v1122_v60 = vld [vmem:[#allocation7 + $0x1b0] sm:$0xff] }
 0x17b   :  { %v731_v62 = vpop.f32.mrf.mxu3 }
 0x17c   :  { %v732_v63 = vadd.f32 %v731_v62, %v712_v61  ;;  %v1085_v61 = vld [vmem:[#allocation7 + $0x88] sm:$0xff]  ;;  %v1102_v62 = vld [vmem:[#allocation7 + $0x110] sm:$0xff] }
 0x17e   :  { %v737_v0 = vmin.f32 %v732_v63, 0.0  ;;  %vm735_vm5 = vcmp.gt.f32.partialorder %v732_v63, 0.0 }
 0x180   :  { %v1303_v1 = vpop.eup %1302  ;;  %v740_v3 = vmul.f32 1.442695, %v737_v0  ;;  %v1084_v0 = vld [vmem:[#allocation7 + $0x80] sm:$0xff] }
 0x181   :  { %v1274_v4 = vadd.f32 -1.0, %v1303_v1  ;;  %v1101_v1 = vld [vmem:[#allocation7 + $0x108] sm:$0xff] }
 0x182   :  { %1304 = vpow2.f32 %v740_v3  ;;  %v1120_v3 = vld [vmem:[#allocation7 + $0x1a0] sm:$0xff] }
 0x183   :  { %v744_v6 = vsel %vm734_vm4, %v652_v55, %v1274_v4  ;;  %v1087_v55 = vld [vmem:[#allocation7 + $0x98] sm:$0xff]  ;;  %v874_v4 = vld [vmem:[%s1576_s6] sm:$0xf] }
 0x184   :  { %900 = vmatmul.f32.vlgmr.msra.gmra.mxu0 %v744_v6  ;;  %940 = vmatmul.f32.vlgmr.msra.gmra.mxu2 %v744_v6 }
 0x185   :  { %1136 = vmatpush.msra.mxu0 %v1083_v5  ;;  %1176 = vmatpush.msra.mxu2 %v1115_v8  ;;  %v1100_v5 = vld [vmem:[#allocation7 + $0x100] sm:$0xff] }
 0x187   :  { %1137 = vmatpush.msra.mxu0 %v1082_v7  ;;  %1177 = vmatpush.msra.mxu2 %v1114_v18 }
 0x188   :  { %v1305_v10 = vpop.eup %1304 }
 0x189   :  { %v1275_v11 = vadd.f32 -1.0, %v1305_v10  ;;  %1138 = vmatpush.msra.mxu0 %v1081_v9  ;;  %1178 = vmatpush.msra.mxu2 %v1113_v21  ;;  %v1118_v9 = vld [vmem:[#allocation7 + $0x190] sm:$0xff]  ;;  %v876_v10 = vperm.slane %v874_v4, 0 }
 0x18b   :  { %v745_v12 = vsel %vm735_vm5, %v732_v63, %v1275_v11  ;;  %1139 = vmatpush.msra.mxu0 %v1080_v13  ;;  %1179 = vmatpush.msra.mxu2 %v1112_v24  ;;  %v1121_v63 = vld [vmem:[#allocation7 + $0x1a8] sm:$0xff] }
 0x18c   :  { %920 = vmatmul.f32.vlgmr.msra.gmra.mxu1 %v745_v12  ;;  %960 = vmatmul.f32.vlgmr.msra.gmra.mxu3 %v745_v12  ;;  %v1117_v11 = vld [vmem:[#allocation7 + $0x188] sm:$0xff] }
 0x18d   :  { %980 = vmatmul.f32.vlgmr.msrb.gmra.mxu0 %v744_v6  ;;  %1020 = vmatmul.f32.vlgmr.msrb.gmra.mxu2 %v744_v6  ;;  %v1119_v6 = vld [vmem:[#allocation7 + $0x198] sm:$0xff] }
 0x18e   :  { %1156 = vmatpush.msra.mxu1 %v1099_v2  ;;  %1140 = vmatpush.msra.mxu0 %v1079_v14 }
 0x18f   :  { %1196 = vmatpush.msra.mxu3 %v1131_v25  ;;  %1180 = vmatpush.msra.mxu2 %v1111_v28 }
 0x190   :  { %1157 = vmatpush.msra.mxu1 %v1098_v15  ;;  %1141 = vmatpush.msra.mxu0 %v1078_v16  ;;  %v877_v15 = vperm.slane %v874_v4, 1 }
 0x191   :  { %1197 = vmatpush.msra.mxu3 %v1130_v29  ;;  %1181 = vmatpush.msra.mxu2 %v1110_v33 }
 0x192   :  { %1158 = vmatpush.msra.mxu1 %v1097_v17  ;;  %1142 = vmatpush.msra.mxu0 %v1077_v19  ;;  %v878_v17 = vperm.slane %v874_v4, 2 }
 0x193   :  { %1198 = vmatpush.msra.mxu3 %v1129_v34  ;;  %1182 = vmatpush.msra.mxu2 %v1109_v37 }
 0x194   :  { %1000 = vmatmul.f32.vlgmr.msrb.gmra.mxu1 %v745_v12  ;;  %1040 = vmatmul.f32.vlgmr.msrb.gmra.mxu3 %v745_v12  ;;  %v1116_v12 = vld [vmem:[#allocation7 + $0x180] sm:$0xff] }
 0x195   :  { %1159 = vmatpush.msra.mxu1 %v1096_v20  ;;  %1143 = vmatpush.msra.mxu0 %v1076_v22 }
 0x196   :  { %1199 = vmatpush.msra.mxu3 %v1128_v38  ;;  %1183 = vmatpush.msra.mxu2 %v1108_v41 }
 0x197   :  { %1160 = vmatpush.msra.mxu1 %v1095_v23  ;;  %1144 = vmatpush.msra.mxu0 %v1075_v26  ;;  %v879_v26 = vperm.slane %v874_v4, 3 }
 0x198   :  { %1200 = vmatpush.msra.mxu3 %v1127_v42  ;;  %1184 = vmatpush.msra.mxu2 %v1107_v44 }
 0x199   :  { %1161 = vmatpush.msra.mxu1 %v1094_v27  ;;  %1145 = vmatpush.msra.mxu0 %v1074_v30 }
 0x19a   :  { %1201 = vmatpush.msra.mxu3 %v1126_v45  ;;  %1185 = vmatpush.msra.mxu2 %v1106_v48 }
 0x19b   :  { %1162 = vmatpush.msra.mxu1 %v1093_v31  ;;  %1146 = vmatpush.msra.mxu0 %v1073_v35 }
 0x19c   :  { %1202 = vmatpush.msra.mxu3 %v1125_v49  ;;  %1186 = vmatpush.msra.mxu2 %v1105_v52  ;;  %v1237_v49 = vld [vmem:[#allocation9 + $0x78] sm:$0xff]  ;;  %v1234_v52 = vld [vmem:[#allocation9 + $0x60] sm:$0xff] }
 0x19d   :  { %1163 = vmatpush.msra.mxu1 %v1092_v36  ;;  %1147 = vmatpush.msra.mxu0 %v1072_v39 }
 0x19e   :  { %1203 = vmatpush.msra.mxu3 %v1124_v53  ;;  %1187 = vmatpush.msra.mxu2 %v1104_v56  ;;  %v1233_v53 = vld [vmem:[#allocation9 + $0x58] sm:$0xff]  ;;  %v1230_v56 = vld [vmem:[#allocation9 + $0x40] sm:$0xff] }
 0x19f   :  { %1164 = vmatpush.msra.mxu1 %v1091_v40  ;;  %1148 = vmatpush.msra.mxu0 %v1071_v43 }
 0x1a0   :  { %1204 = vmatpush.msra.mxu3 %v1123_v57  ;;  %1188 = vmatpush.msra.mxu2 %v1103_v59  ;;  %v1229_v57 = vld [vmem:[#allocation9 + $0x38] sm:$0xff]  ;;  %v1227_v59 = vld [vmem:[#allocation9 + $0x28] sm:$0xff] }
 0x1a1   :  { %1165 = vmatpush.msra.mxu1 %v1090_v32  ;;  %1149 = vmatpush.msra.mxu0 %v1070_v46 }
 0x1a2   :  { %1205 = vmatpush.msra.mxu3 %v1122_v60  ;;  %1189 = vmatpush.msra.mxu2 %v1102_v62  ;;  %v1226_v60 = vld [vmem:[#allocation9 + $0x20] sm:$0xff]  ;;  %v1224_v62 = vld [vmem:[#allocation9 + $0x10] sm:$0xff] }
 0x1a3   :  { %1166 = vmatpush.msra.mxu1 %v1089_v47  ;;  %1150 = vmatpush.msra.mxu0 %v1069_v50  ;;  %v1236_v50 = vld [vmem:[#allocation9 + $0x70] sm:$0xff] }
 0x1a4   :  { %1206 = vmatpush.msra.mxu3 %v1121_v63  ;;  %1190 = vmatpush.msra.mxu2 %v1101_v1  ;;  %v1223_v63 = vld [vmem:[#allocation9 + $0x8] sm:$0xff]  ;;  %v1292_v1 = vld [vmem:[%s1578_s8] ss:$0 sm:$0xff] }
 0x1a5   :  { %1167 = vmatpush.msra.mxu1 %v1088_v51  ;;  %1151 = vmatpush.msra.mxu0 %v1068_v54  ;;  %v1235_v51 = vld [vmem:[#allocation9 + $0x68] sm:$0xff]  ;;  %v1232_v54 = vld [vmem:[#allocation9 + $0x50] sm:$0xff] }
 0x1a6   :  { %1207 = vmatpush.msra.mxu3 %v1120_v3  ;;  %1191 = vmatpush.msra.mxu2 %v1100_v5 }
 0x1a7   :  { %1168 = vmatpush.msra.mxu1 %v1087_v55  ;;  %1242 = vmatpush.msrb.mxu0 %v1237_v49  ;;  %v1231_v55 = vld [vmem:[#allocation9 + $0x48] sm:$0xff] }
 0x1a8   :  { %1208 = vmatpush.msra.mxu3 %v1119_v6 }
 0x1a9   :  { %1169 = vmatpush.msra.mxu1 %v1086_v58  ;;  %1243 = vmatpush.msrb.mxu0 %v1236_v50  ;;  %v1228_v58 = vld [vmem:[#allocation9 + $0x30] sm:$0xff] }
 0x1aa   :  { %1209 = vmatpush.msra.mxu3 %v1118_v9 }
 0x1ab   :  { %1170 = vmatpush.msra.mxu1 %v1085_v61  ;;  %1244 = vmatpush.msrb.mxu0 %v1235_v51  ;;  %v1225_v61 = vld [vmem:[#allocation9 + $0x18] sm:$0xff] }
 0x1ac   :  { %1210 = vmatpush.msra.mxu3 %v1117_v11 }
 0x1ad   :  { %1171 = vmatpush.msra.mxu1 %v1084_v0  ;;  %1245 = vmatpush.msrb.mxu0 %v1234_v52  ;;  %v1222_v0 = vld [vmem:[#allocation9] sm:$0xff] }
 0x1ae   :  { %1211 = vmatpush.msra.mxu3 %v1116_v12 }
 0x1af   :  { %1246 = vmatpush.msrb.mxu0 %v1233_v53 }
 0x1b1   :  { %1247 = vmatpush.msrb.mxu0 %v1232_v54 }
 0x1b3   :  { %1248 = vmatpush.msrb.mxu0 %v1231_v55 }
 0x1b5   :  { %1249 = vmatpush.msrb.mxu0 %v1230_v56 }
 0x1b7   :  { %1250 = vmatpush.msrb.mxu0 %v1229_v57 }
 0x1b9   :  { %1251 = vmatpush.msrb.mxu0 %v1228_v58 }
 0x1bb   :  { %1252 = vmatpush.msrb.mxu0 %v1227_v59 }
 0x1bd   :  { %1253 = vmatpush.msrb.mxu0 %v1226_v60 }
 0x1bf   :  { %1254 = vmatpush.msrb.mxu0 %v1225_v61 }
 0x1c1   :  { %1255 = vmatpush.msrb.mxu0 %v1224_v62 }
 0x1c3   :  { %1256 = vmatpush.msrb.mxu0 %v1223_v63 }
 0x1c5   :  { %1257 = vmatpush.msrb.mxu0 %v1222_v0 }
 0x201   :  { %v901_v7 = vpop.f32.mrf.mxu0 }
 0x202   :  { %v902_v13 = vadd.f32 %v901_v7, %v876_v10 }
 0x207   :  { %v941_v2 = vpop.f32.mrf.mxu2 }
 0x208   :  { %v942_v19 = vadd.f32 %v941_v2, %v877_v15 }
 0x209   :  { %v921_v14 = vpop.f32.mrf.mxu1 }
 0x20a   :  { %v922_v8 = vadd.f32 %v921_v14, %v902_v13  ;;  %v981_v18 = vpop.f32.mrf.mxu0 }
 0x20b   :  { %v982_v22 = vadd.f32 %v981_v18, %v878_v17 }
 0x20c   :  { %v1048_v16 = vmin.f32 %v922_v8, 0.0  ;;  %vm1044_vm6 = vcmp.gt.f32.partialorder %v922_v8, 0.0 }
 0x20e   :  { %v1052_v20 = vmul.f32 1.442695, %v1048_v16 }
 0x20f   :  { %v961_v21 = vpop.f32.mrf.mxu3 }
 0x210   :  { %1306 = vpow2.f32 %v1052_v20  ;;  %v962_v23 = vadd.f32 %v961_v21, %v942_v19  ;;  %v1021_v28 = vpop.f32.mrf.mxu2 }
 0x211   :  { %v1001_v24 = vpop.f32.mrf.mxu1  ;;  %v1022_v33 = vadd.f32 %v1021_v28, %v879_v26 }
 0x212   :  { %v1049_v25 = vmin.f32 %v962_v23, 0.0  ;;  %v1002_v27 = vadd.f32 %v1001_v24, %v982_v22  ;;  %vm1045_vm7 = vcmp.gt.f32.partialorder %v962_v23, 0.0 }
 0x214   :  { %v1054_v29 = vmul.f32 1.442695, %v1049_v25  ;;  %v1050_v30 = vmin.f32 %v1002_v27, 0.0  ;;  %vm1046_vm8 = vcmp.gt.f32.partialorder %v1002_v27, 0.0 }
 0x216   :  { %v1307_v31 = vpop.eup %1306  ;;  %1308 = vpow2.f32 %v1054_v29  ;;  %v1056_v34 = vmul.f32 1.442695, %v1050_v30 }
 0x217   :  { %v1276_v35 = vadd.f32 -1.0, %v1307_v31  ;;  %v1041_v36 = vpop.f32.mrf.mxu3 }
 0x218   :  { %1310 = vpow2.f32 %v1056_v34  ;;  %v1042_v37 = vadd.f32 %v1041_v36, %v1022_v33 }
 0x219   :  { %v1064_v38 = vsel %vm1044_vm6, %v922_v8, %v1276_v35  ;;  %v1293_v8 = vld [vmem:[%s1580_s10] ss:$0 sm:$0xff] }
 0x21a   :  { %v1051_v39 = vmin.f32 %v1042_v37, 0.0  ;;  %1152 = vmatmul.f32.vlgmr.msra.gmra.mxu0 %v1064_v38  ;;  %vm1047_vm9 = vcmp.gt.f32.partialorder %v1042_v37, 0.0 }
 0x21c   :  { %v1309_v40 = vpop.eup %1308  ;;  %v1058_v41 = vmul.f32 1.442695, %v1051_v39 }
 0x21d   :  { %v1277_v42 = vadd.f32 -1.0, %v1309_v40 }
 0x21e   :  { %v1311_v43 = vpop.eup %1310  ;;  %1312 = vpow2.f32 %v1058_v41 }
 0x21f   :  { %v1278_v32 = vadd.f32 -1.0, %v1311_v43  ;;  %v1065_v44 = vsel %vm1045_vm7, %v962_v23, %v1277_v42 }
 0x220   :  { %1172 = vmatmul.f32.vlgmr.msra.gmra.mxu1 %v1065_v44 }
 0x221   :  { %v1066_v45 = vsel %vm1046_vm8, %v1002_v27, %v1278_v32 }
 0x222   :  { %1192 = vmatmul.f32.vlgmr.msra.gmra.mxu2 %v1066_v45 }
 0x224   :  { %v1313_v46 = vpop.eup %1312 }
 0x225   :  { %v1279_v47 = vadd.f32 -1.0, %v1313_v46 }
 0x227   :  { %v1067_v48 = vsel %vm1047_vm9, %v1042_v37, %v1279_v47 }
 0x228   :  { %1212 = vmatmul.f32.vlgmr.msra.gmra.mxu3 %v1067_v48 }
 0x297   :  { %v1153_v3 = vpop.f32.mrf.mxu0 }
 0x298   :  { %v1154_v5 = vadd.f32 %v1292_v1, %v1153_v3 }
 0x29d   :  { %v1173_v4 = vpop.f32.mrf.mxu1 }
 0x29e   :  { %v1174_v7 = vadd.f32 %v1173_v4, %v1154_v5 }
 0x2a5   :  { %v1193_v6 = vpop.f32.mrf.mxu2 }
 0x2a6   :  { %v1194_v9 = vadd.f32 %v1193_v6, %v1174_v7 }
 0x2ab   :  { %v1213_v10 = vpop.f32.mrf.mxu3 }
 0x2ac   :  { %v1214_v11 = vadd.f32 %v1213_v10, %v1194_v9 }
 0x2ae   :  { %v1217_v12 = vmin.f32 %v1214_v11, 0.0  ;;  %vm1216_vm10 = vcmp.gt.f32.partialorder %v1214_v11, 0.0 }
 0x2b0   :  { %v1218_v13 = vmul.f32 1.442695, %v1217_v12 }
 0x2b2   :  { %1314 = vpow2.f32 %v1218_v13 }
 0x2b8   :  { %v1315_v2 = vpop.eup %1314 }
 0x2b9   :  { %v1280_v14 = vadd.f32 -1.0, %v1315_v2 }
 0x2bb   :  { %v1221_v15 = vsel %vm1216_vm10, %v1214_v11, %v1280_v14 }
 0x2bc   :  { %1258 = vmatmul.f32.vlgmr.msrb.gmra.mxu0 %v1221_v15 }
 0x339   :  { %v1259_v16 = vpop.f32.mrf.mxu0 }
 0x33a   :  { %v1260_v17 = vadd.f32 %v1293_v8, %v1259_v16 }
 0x33c   :  { %1262 = vst [vmem:[%s1581_s11] sm:$0xff] %v1260_v17 }
 0x33d   :  { %1267 = vsyncpa [#allocation3], 1 }
 0x33e   :  { %1268 = vsyncpa [#allocation5], 1 }
 0x33f   :  { %1269 = vsyncpa [#allocation8], 1 }

</bundles_post_ra>
